<compile_context>
chip_gen: v7x
topology: tpu7x:2x2x1
jax: 0.10.0
libtpu: 0.0.40
codegen_flags: <defaults>
</compile_context>

<pallas_src>
import jax
import jax.numpy as jnp
from jax.experimental import pallas as pl
from jax.experimental.pallas import tpu as pltpu
from math import ceil

# ------------------------- model configuration -------------------------------
D_MODEL = 32
EXPAND = 2
D_STATE = 16
D_CONV = 4
D_INNER = EXPAND * D_MODEL            # 64
DT_RANK = ceil(D_MODEL / 16)          # 2
RMS_EPS = 1e-5

ED2 = 2 * D_INNER                     # both branches fused on lanes: 128
N2 = 2 * D_STATE                      # 32

# fused x_proj/dt_proj output lane layout (256 lanes, tile-aligned)
XP_B = 128                            # [B1|B2] at lanes 128:160
XP_C = 160                            # [C1|C2] at lanes 160:192 (192:256 zero pad)
XP_W = 256                            # width of the delta/B/C projection block
# parameter-slab row layout (24 rows x 128 lanes)
PROW_CONVW = 0                        # rows 0:K      depthwise conv weights
PROW_CONVB = 4                        # conv bias
PROW_DTB = 5                          # dt_proj bias
PROW_D = 6                            # D (skip) vector
PROW_A = 8                            # rows 8:8+N    A = -exp(A_log)  (sublane aligned)
P_ROWS = 24


def _silu(x):
    return x * jax.nn.sigmoid(x)


# ----------------------------- Pallas kernel ---------------------------------
def cobra_kernel(x_ref, w_in_ref, w_main_ref, p_ref, out_ref):
    TB, L, D = x_ref.shape
    N = D_STATE
    K = D_CONV
    ED = D_INNER
    RB = TB * L

    xf = x_ref[...].reshape(RB, D).astype(jnp.float32)

    # RMSNorm (shared between branches; per-branch rms weight is folded into w_in)
    xn = xf * jax.lax.rsqrt(jnp.mean(xf * xf, axis=-1, keepdims=True) + RMS_EPS)

    # fused in_proj for both branches: columns = [xs1 | xs2 | z1 | z2]
    proj = jnp.dot(xn, w_in_ref[...], preferred_element_type=jnp.float32)   # (RB, 256)
    xs = proj[:, :ED2]          # conv/scan path, both branches   (RB, 128)
    zz = proj[:, ED2:]          # gate path, both branches        (RB, 128)

    # depthwise causal conv1d (kernel K, left pad K-1), both branches at once.
    # Rows are (batch, time) flattened; roll shifts along time, the mask kills
    # contributions that would cross a batch boundary.
    t_idx = jax.lax.broadcasted_iota(jnp.int32, (TB, L, ED2), 1).reshape(RB, ED2)
    xc = jnp.zeros((RB, ED2), jnp.float32) + p_ref[PROW_CONVB:PROW_CONVB + 1, :]
    for k in range(K):
        s = K - 1 - k
        w_k = p_ref[PROW_CONVW + k:PROW_CONVW + k + 1, :]                   # (1, 128)
        if s == 0:
            shifted = xs
        else:
            shifted = jnp.where(t_idx >= s, pltpu.roll(xs, shift=s, axis=0), 0.0)
        xc = xc + shifted * w_k
    xc = _silu(xc)

    # fused x_proj + dt_proj (dt low-rank matrices pre-multiplied into w_main):
    #   lanes 0:128  -> delta pre-activation (both branches, block-diagonal)
    #   lanes 128:160 -> [B1|B2], lanes 160:192 -> [C1|C2], lanes 192:256 zero pad
    xp = jnp.dot(xc, w_main_ref[:, :XP_W], preferred_element_type=jnp.float32)  # (RB, 256)
    delta = jax.nn.softplus(xp[:, :ED2] + p_ref[PROW_DTB:PROW_DTB + 1, :])       # (RB, 128)
    Bm = xp[:, XP_B:XP_B + N2]               # (RB, 32) = [B1 | B2]
    Cm = xp[:, XP_C:XP_C + N2]               # (RB, 32) = [C1 | C2]

    # selective scan, vectorized over the batch tile.
    # State h: (TB, N, 2*ED) -- state index on sublanes, both branches' channels on lanes.
    A = p_ref[PROW_A:PROW_A + N, :]          # (N, 128) = -exp(A_log), both branches
    dxc = delta * xc

    delta3 = delta.reshape(TB, L, ED2)
    dxc3 = dxc.reshape(TB, L, ED2)
    Bm3 = Bm.reshape(TB, L, N2)
    Cm3 = Cm.reshape(TB, L, N2)

    left = jax.lax.broadcasted_iota(jnp.int32, (TB, N, ED2), 2) < ED
    h = jnp.zeros((TB, N, ED2), jnp.float32)
    ys = []
    # TODO(synk): for large L switch this unrolled loop to lax.fori_loop with a carried h
    #             (and a VMEM scratch for y) to bound trace size and vreg pressure.
    for t in range(L):
        dA = jnp.exp(delta3[:, t, :][:, None, :] * A[None, :, :])           # (TB, N, 128)
        Bf = jnp.where(left, Bm3[:, t, :N][:, :, None], Bm3[:, t, N:][:, :, None])
        Cf = jnp.where(left, Cm3[:, t, :N][:, :, None], Cm3[:, t, N:][:, :, None])
        h = dA * h + dxc3[:, t, :][:, None, :] * Bf
        ys.append(jnp.sum(h * Cf, axis=1, keepdims=True))                   # (TB, 1, 128)

    y = jnp.concatenate(ys, axis=1).reshape(RB, ED2)                        # (RB, 128)
    y = y + p_ref[PROW_D:PROW_D + 1, :] * xc
    y = y * _silu(zz)

    # fused (block-diagonal) out_proj -> [out1 | out2], residual, then COBRA gate u*v
    outs = jnp.dot(y, w_main_ref[:, XP_W:], preferred_element_type=jnp.float32)  # (RB, 128)
    res = (outs[:, :D] + xf) * (outs[:, D:2 * D] + xf)                      # (RB, D)
    out_ref[...] = res.reshape(TB, L, D).astype(out_ref.dtype)


# -------------------------- parameter packing ---------------------------------
def pack_params(p1, p2):
    """Pack both branches' 26 parameter tensors into 3 lane-dense slabs.

    w_in   (D, 256)  : [rms1*w_in_x1 | rms2*w_in_x2 | rms1*w_in_z1 | rms2*w_in_z2]
    w_main (128, 384): cols 0:256 block-diag fused x_proj+dt_proj
                        (cols 0:128 delta = W_delta@W_dt, 128:160 B, 160:192 C, pad),
                       cols 256:384 block-diag out_proj (zero-padded)
    p_slab (24, 128) : conv weights/bias, dt bias, D, A=-exp(A_log)
    """
    (rms1, wx1, wz1, cw1, cb1, wd1, wB1, wC1, wdt1, bdt1, al1, d1, wo1) = p1
    (rms2, wx2, wz2, cw2, cb2, wd2, wB2, wC2, wdt2, bdt2, al2, d2, wo2) = p2
    D, ED, N, K = D_MODEL, D_INNER, D_STATE, D_CONV

    # fold RMSNorm weight into in_proj: (x*rsqrt(.)*rms) @ W == (x*rsqrt(.)) @ (rms.T * W)
    w_in = jnp.concatenate(
        [rms1.T * wx1, rms2.T * wx2, rms1.T * wz1, rms2.T * wz2], axis=1)   # (D, 256)

    w_main = jnp.zeros((ED2, XP_W + ED2), jnp.float32)                      # (128, 384)
    # fold dt_proj into x_proj: (xc @ W_delta) @ W_dt == xc @ (W_delta @ W_dt)
    w_main = w_main.at[:ED, 0:ED].set(wd1 @ wdt1)
    w_main = w_main.at[ED:, ED:ED2].set(wd2 @ wdt2)
    w_main = w_main.at[:ED, XP_B:XP_B + N].set(wB1)
    w_main = w_main.at[ED:, XP_B + N:XP_B + 2 * N].set(wB2)
    w_main = w_main.at[:ED, XP_C:XP_C + N].set(wC1)
    w_main = w_main.at[ED:, XP_C + N:XP_C + 2 * N].set(wC2)
    w_main = w_main.at[:ED, XP_W:XP_W + D].set(wo1)
    w_main = w_main.at[ED:, XP_W + D:XP_W + 2 * D].set(wo2)

    p_slab = jnp.zeros((P_ROWS, ED2), jnp.float32)                          # (24, 128)
    p_slab = p_slab.at[PROW_CONVW:PROW_CONVW + K, :ED].set(cw1)
    p_slab = p_slab.at[PROW_CONVW:PROW_CONVW + K, ED:].set(cw2)
    p_slab = p_slab.at[PROW_CONVB, :ED].set(cb1[0])
    p_slab = p_slab.at[PROW_CONVB, ED:].set(cb2[0])
    p_slab = p_slab.at[PROW_DTB, :ED].set(bdt1[0])
    p_slab = p_slab.at[PROW_DTB, ED:].set(bdt2[0])
    p_slab = p_slab.at[PROW_D, :ED].set(d1[0])
    p_slab = p_slab.at[PROW_D, ED:].set(d2[0])
    p_slab = p_slab.at[PROW_A:PROW_A + N, :ED].set(-jnp.exp(al1).T)
    p_slab = p_slab.at[PROW_A:PROW_A + N, ED:].set(-jnp.exp(al2).T)
    return w_in, w_main, p_slab


# --------------------------------- wrapper -------------------------------------
def cobra_gating_unit(x, params1, params2, batch_tile=None):
    B, L, D = x.shape
    assert D == D_MODEL and L % 8 == 0, "kernel assumes d_model=32 and L % 8 == 0"
    w_in, w_main, p_slab = pack_params(params1, params2)

    # batch tile: fold several batch elements onto the sublane/row axis per grid step
    # (kept modest so the (TB, N, 128) scan state stays in registers).
    tb = batch_tile if batch_tile is not None else max(1, min(B, 4))
    Bp = pl.cdiv(B, tb) * tb
    x_in = x if Bp == B else jnp.pad(x, ((0, Bp - B), (0, 0), (0, 0)))

    out = pl.pallas_call(
        cobra_kernel,
        out_shape=jax.ShapeDtypeStruct((Bp, L, D), jnp.float32),
        grid_spec=pltpu.PrefetchScalarGridSpec(
            num_scalar_prefetch=0,
            grid=(Bp // tb,),
            in_specs=[
                pl.BlockSpec((tb, L, D), lambda i: (i, 0, 0)),
                pl.BlockSpec(w_in.shape, lambda i: (0, 0)),
                pl.BlockSpec(w_main.shape, lambda i: (0, 0)),
                pl.BlockSpec(p_slab.shape, lambda i: (0, 0)),
            ],
            out_specs=pl.BlockSpec((tb, L, D), lambda i: (i, 0, 0)),
        ),
        compiler_params=pltpu.CompilerParams(
            dimension_semantics=("parallel",)),
    )(x_in, w_in, w_main, p_slab)
    return out[:B]


# --------------------- deterministic parameter init --------------------------
def init_mamba_params(key):
    D, ED, N, R, K = D_MODEL, D_INNER, D_STATE, DT_RANK, D_CONV
    ks = jax.random.split(key, 10)

    def rnd(k, shape, scale):
        return jax.random.normal(k, shape, jnp.float32) * scale

    rms_w = jnp.ones((1, D), jnp.float32)
    w_in_x = rnd(ks[0], (D, ED), D ** -0.5)
    w_in_z = rnd(ks[1], (D, ED), D ** -0.5)
    conv_w = rnd(ks[2], (K, ED), K ** -0.5)
    conv_b = rnd(ks[3], (1, ED), 0.1)
    w_delta = rnd(ks[4], (ED, R), ED ** -0.5)
    w_B = rnd(ks[5], (ED, N), ED ** -0.5)
    w_C = rnd(ks[6], (ED, N), ED ** -0.5)
    w_dt = rnd(ks[7], (R, ED), R ** -0.5)
    b_dt = rnd(ks[8], (1, ED), 0.1)
    a_log = jnp.log(jnp.tile(
        jnp.arange(1, N + 1, dtype=jnp.float32)[None, :], (ED, 1)))  # S4D-real init
    d_vec = jnp.ones((1, ED), jnp.float32)
    w_out = rnd(ks[9], (ED, D), ED ** -0.5)
    return [rms_w, w_in_x, w_in_z, conv_w, conv_b, w_delta, w_B, w_C,
            w_dt, b_dt, a_log, d_vec, w_out]


# --------------------------- pure-JAX reference -------------------------------
def mamba_ref(x, p):
    (rms_w, w_in_x, w_in_z, conv_w, conv_b, w_delta, w_B, w_C,
     w_dt, b_dt, a_log, d_vec, w_out) = p
    B, L, D = x.shape
    K = conv_w.shape[0]
    ED = w_in_x.shape[1]
    N = a_log.shape[1]

    xn = x * jax.lax.rsqrt(jnp.mean(x * x, axis=-1, keepdims=True) + RMS_EPS) * rms_w
    xs = xn @ w_in_x
    z = xn @ w_in_z

    xpad = jnp.pad(xs, ((0, 0), (K - 1, 0), (0, 0)))
    xc = sum(conv_w[k][None, None, :] * xpad[:, k:k + L, :] for k in range(K)) + conv_b
    xc = jax.nn.silu(xc)

    delta = jax.nn.softplus((xc @ w_delta) @ w_dt + b_dt)
    b_mat = xc @ w_B
    c_mat = xc @ w_C
    a = -jnp.exp(a_log)
    delta_a = jnp.exp(delta[..., None] * a)                    # (B, L, ED, N)
    bx = (delta * xc)[..., None] * b_mat[:, :, None, :]

    def scan_one(da_b, bx_b):
        def step(h, inp):
            da_t, bx_t = inp
            h = da_t * h + bx_t
            return h, h
        h0 = jnp.zeros((ED, N), jnp.float32)
        _, hs = jax.lax.scan(step, h0, (da_b, bx_b))
        return hs

    h_all = jax.vmap(scan_one)(delta_a, bx)                    # (B, L, ED, N)
    y = jnp.sum(h_all * c_mat[:, :, None, :], axis=-1) + d_vec * xc
    y = y * jax.nn.silu(z)
    return y @ w_out + x


# --------------------------------- main ---------------------------------------
if __name__ == "__main__":
    B, L = 2, 8
    key = jax.random.PRNGKey(0)
    kx, k1, k2 = jax.random.split(key, 3)
    x = jax.random.normal(kx, (B, L, D_MODEL), jnp.float32)
    p1 = init_mamba_params(k1)   # COB_1 parameters
    p2 = init_mamba_params(k2)   # COB_2 parameters

    out = cobra_gating_unit(x, p1, p2)
    out = jax.block_until_ready(out)

    ref = mamba_ref(x, p1) * mamba_ref(x, p2)
    err = float(jnp.max(jnp.abs(out - ref)))
    assert err < 2e-2, f"mismatch vs reference: {err}"
    print("KERNEL_OK")
</pallas_src>

<mosaic_0001>
module attributes {stable_mosaic.version = 11 : i64} {
  func.func @cobra_kernel(%arg0: i32, %arg1: memref<2x8x32xf32, #tpu.memory_space<vmem>>, %arg2: memref<32x256xf32, #tpu.memory_space<vmem>>, %arg3: memref<128x384xf32, #tpu.memory_space<vmem>>, %arg4: memref<24x128xf32, #tpu.memory_space<vmem>>, %arg5: memref<2x8x32xf32, #tpu.memory_space<vmem>>) attributes {dimension_semantics = [#tpu.dimension_semantics<parallel>], iteration_bounds = array<i64: 1>, scalar_prefetch = 0 : i64, scratch_operands = 0 : i64, tpu.core_type = #tpu.core_type<tc>, window_params = [{transform_indices = @transform_0, window_bounds = array<i64: 2, 8, 32>}, {pipeline_mode = #tpu.pipeline_mode<synchronous>, transform_indices = @transform_1, window_bounds = array<i64: 32, 256>}, {pipeline_mode = #tpu.pipeline_mode<synchronous>, transform_indices = @transform_2, window_bounds = array<i64: 128, 384>}, {pipeline_mode = #tpu.pipeline_mode<synchronous>, transform_indices = @transform_3, window_bounds = array<i64: 24, 128>}, {transform_indices = @transform_4, window_bounds = array<i64: 2, 8, 32>}]} {
    %c0 = arith.constant 0 : index
    %c0_0 = arith.constant 0 : index
    %c0_1 = arith.constant 0 : index
    %0 = vector.load %arg1[%c0, %c0_0, %c0_1] : memref<2x8x32xf32, #tpu.memory_space<vmem>>, vector<2x8x32xf32>
    %1 = vector.shape_cast %0 : vector<2x8x32xf32> to vector<16x32xf32>
    %2 = arith.mulf %1, %1 : vector<16x32xf32>
    %cst = arith.constant dense<0.000000e+00> : vector<16xf32>
    %3 = vector.multi_reduction <add>, %2, %cst [1] : vector<16x32xf32> to vector<16xf32>
    %4 = vector.shape_cast %3 : vector<16xf32> to vector<16x1xf32>
    %cst_2 = arith.constant 3.200000e+01 : f32
    %5 = vector.broadcast %cst_2 : f32 to vector<16x1xf32>
    %6 = arith.divf %4, %5 : vector<16x1xf32>
    %cst_3 = arith.constant 9.99999974E-6 : f32
    %7 = vector.broadcast %cst_3 : f32 to vector<16x1xf32>
    %8 = arith.addf %6, %7 : vector<16x1xf32>
    %9 = math.rsqrt %8 : vector<16x1xf32>
    %10 = vector.broadcast %9 : vector<16x1xf32> to vector<16x32xf32>
    %11 = arith.mulf %1, %10 : vector<16x32xf32>
    %c0_4 = arith.constant 0 : index
    %c0_5 = arith.constant 0 : index
    %12 = vector.load %arg2[%c0_4, %c0_5] : memref<32x256xf32, #tpu.memory_space<vmem>>, vector<32x256xf32>
    %cst_6 = arith.constant dense<0.000000e+00> : vector<16x256xf32>
    %13 = tpu.matmul %11, %12, %cst_6 {dimension_numbers = #tpu.dot_dimension_numbers<[1], [0], [0], [1], [0, 0, 1, 1], [], []>} : vector<16x32xf32>, vector<32x256xf32>, vector<16x256xf32> -> vector<16x256xf32>
    %14 = vector.extract_strided_slice %13 {offsets = [0, 0], sizes = [16, 128], strides = [1, 1]} : vector<16x256xf32> to vector<16x128xf32>
    %15 = vector.extract_strided_slice %13 {offsets = [0, 128], sizes = [16, 128], strides = [1, 1]} : vector<16x256xf32> to vector<16x128xf32>
    %16 = tpu.iota {dimensions = array<i32: 1>} : vector<2x8x128xi32>
    %17 = vector.shape_cast %16 : vector<2x8x128xi32> to vector<16x128xi32>
    %cst_7 = arith.constant 0.000000e+00 : f32
    %18 = vector.broadcast %cst_7 : f32 to vector<16x128xf32>
    %c4 = arith.constant 4 : index
    %c0_8 = arith.constant 0 : index
    %19 = vector.load %arg4[%c4, %c0_8] : memref<24x128xf32, #tpu.memory_space<vmem>>, vector<1x128xf32>
    %20 = vector.broadcast %19 : vector<1x128xf32> to vector<16x128xf32>
    %21 = arith.addf %18, %20 : vector<16x128xf32>
    %c0_9 = arith.constant 0 : index
    %c0_10 = arith.constant 0 : index
    %22 = vector.load %arg4[%c0_9, %c0_10] : memref<24x128xf32, #tpu.memory_space<vmem>>, vector<1x128xf32>
    %c3_i32 = arith.constant 3 : i32
    %23 = vector.broadcast %c3_i32 : i32 to vector<16x128xi32>
    %24 = arith.cmpi sge, %17, %23 : vector<16x128xi32>
    %c3_i32_11 = arith.constant 3 : i32
    %25 = tpu.dynamic_rotate %14 by %c3_i32_11 dim 0 : vector<16x128xf32>, i32 -> vector<16x128xf32>
    %cst_12 = arith.constant 0.000000e+00 : f32
    %26 = vector.broadcast %cst_12 : f32 to vector<16x128xf32>
    %27 = arith.select %24, %25, %26 : vector<16x128xi1>, vector<16x128xf32>
    %28 = vector.broadcast %22 : vector<1x128xf32> to vector<16x128xf32>
    %29 = arith.mulf %27, %28 : vector<16x128xf32>
    %30 = arith.addf %21, %29 : vector<16x128xf32>
    %c1 = arith.constant 1 : index
    %c0_13 = arith.constant 0 : index
    %31 = vector.load %arg4[%c1, %c0_13] : memref<24x128xf32, #tpu.memory_space<vmem>>, vector<1x128xf32>
    %c2_i32 = arith.constant 2 : i32
    %32 = vector.broadcast %c2_i32 : i32 to vector<16x128xi32>
    %33 = arith.cmpi sge, %17, %32 : vector<16x128xi32>
    %c2_i32_14 = arith.constant 2 : i32
    %34 = tpu.dynamic_rotate %14 by %c2_i32_14 dim 0 : vector<16x128xf32>, i32 -> vector<16x128xf32>
    %cst_15 = arith.constant 0.000000e+00 : f32
    %35 = vector.broadcast %cst_15 : f32 to vector<16x128xf32>
    %36 = arith.select %33, %34, %35 : vector<16x128xi1>, vector<16x128xf32>
    %37 = vector.broadcast %31 : vector<1x128xf32> to vector<16x128xf32>
    %38 = arith.mulf %36, %37 : vector<16x128xf32>
    %39 = arith.addf %30, %38 : vector<16x128xf32>
    %c2 = arith.constant 2 : index
    %c0_16 = arith.constant 0 : index
    %40 = vector.load %arg4[%c2, %c0_16] : memref<24x128xf32, #tpu.memory_space<vmem>>, vector<1x128xf32>
    %c1_i32 = arith.constant 1 : i32
    %41 = vector.broadcast %c1_i32 : i32 to vector<16x128xi32>
    %42 = arith.cmpi sge, %17, %41 : vector<16x128xi32>
    %c1_i32_17 = arith.constant 1 : i32
    %43 = tpu.dynamic_rotate %14 by %c1_i32_17 dim 0 : vector<16x128xf32>, i32 -> vector<16x128xf32>
    %cst_18 = arith.constant 0.000000e+00 : f32
    %44 = vector.broadcast %cst_18 : f32 to vector<16x128xf32>
    %45 = arith.select %42, %43, %44 : vector<16x128xi1>, vector<16x128xf32>
    %46 = vector.broadcast %40 : vector<1x128xf32> to vector<16x128xf32>
    %47 = arith.mulf %45, %46 : vector<16x128xf32>
    %48 = arith.addf %39, %47 : vector<16x128xf32>
    %c3 = arith.constant 3 : index
    %c0_19 = arith.constant 0 : index
    %49 = vector.load %arg4[%c3, %c0_19] : memref<24x128xf32, #tpu.memory_space<vmem>>, vector<1x128xf32>
    %50 = vector.broadcast %49 : vector<1x128xf32> to vector<16x128xf32>
    %51 = arith.mulf %14, %50 : vector<16x128xf32>
    %52 = arith.addf %48, %51 : vector<16x128xf32>
    %53 = arith.negf %52 : vector<16x128xf32>
    %54 = math.exp %53 : vector<16x128xf32>
    %cst_20 = arith.constant 1.000000e+00 : f32
    %55 = vector.broadcast %cst_20 : f32 to vector<16x128xf32>
    %56 = arith.addf %55, %54 : vector<16x128xf32>
    %57 = arith.divf %55, %56 : vector<16x128xf32>
    %58 = arith.mulf %52, %57 : vector<16x128xf32>
    %c0_21 = arith.constant 0 : index
    %c0_22 = arith.constant 0 : index
    %59 = vector.load %arg3[%c0_21, %c0_22] : memref<128x384xf32, #tpu.memory_space<vmem>>, vector<128x256xf32>
    %cst_23 = arith.constant dense<0.000000e+00> : vector<16x256xf32>
    %60 = tpu.matmul %58, %59, %cst_23 {dimension_numbers = #tpu.dot_dimension_numbers<[1], [0], [0], [1], [0, 0, 1, 1], [], []>} : vector<16x128xf32>, vector<128x256xf32>, vector<16x256xf32> -> vector<16x256xf32>
    %61 = vector.extract_strided_slice %60 {offsets = [0, 0], sizes = [16, 128], strides = [1, 1]} : vector<16x256xf32> to vector<16x128xf32>
    %c5 = arith.constant 5 : index
    %c0_24 = arith.constant 0 : index
    %62 = vector.load %arg4[%c5, %c0_24] : memref<24x128xf32, #tpu.memory_space<vmem>>, vector<1x128xf32>
    %63 = vector.broadcast %62 : vector<1x128xf32> to vector<16x128xf32>
    %64 = arith.addf %61, %63 : vector<16x128xf32>
    %cst_25 = arith.constant 0.000000e+00 : f32
    %65 = vector.broadcast %cst_25 : f32 to vector<16x128xf32>
    %66 = arith.maximumf %64, %65 : vector<16x128xf32>
    %67 = vector.broadcast %cst_25 : f32 to vector<16x128xf32>
    %68 = arith.subf %64, %67 : vector<16x128xf32>
    %69 = arith.cmpf one, %68, %68 : vector<16x128xf32>
    %70 = vector.broadcast %cst_25 : f32 to vector<16x128xf32>
    %71 = arith.addf %64, %70 : vector<16x128xf32>
    %72 = math.absf %68 : vector<16x128xf32>
    %cst_26 = arith.constant 0.000000e+00 : f32
    %73 = vector.broadcast %cst_26 : f32 to vector<16x128xf32>
    %74 = arith.subf %73, %72 : vector<16x128xf32>
    %75 = math.exp %74 : vector<16x128xf32>
    %76 = math.log1p %75 : vector<16x128xf32>
    %77 = arith.addf %66, %76 : vector<16x128xf32>
    %78 = arith.select %69, %71, %77 : vector<16x128xi1>, vector<16x128xf32>
    %79 = vector.extract_strided_slice %60 {offsets = [0, 128], sizes = [16, 32], strides = [1, 1]} : vector<16x256xf32> to vector<16x32xf32>
    %80 = vector.extract_strided_slice %60 {offsets = [0, 160], sizes = [16, 32], strides = [1, 1]} : vector<16x256xf32> to vector<16x32xf32>
    %c8 = arith.constant 8 : index
    %c0_27 = arith.constant 0 : index
    %81 = vector.load %arg4[%c8, %c0_27] : memref<24x128xf32, #tpu.memory_space<vmem>>, vector<16x128xf32>
    %82 = arith.mulf %78, %58 : vector<16x128xf32>
    %83 = vector.shape_cast %78 : vector<16x128xf32> to vector<2x8x128xf32>
    %84 = vector.shape_cast %82 : vector<16x128xf32> to vector<2x8x128xf32>
    %85 = vector.shape_cast %79 : vector<16x32xf32> to vector<2x8x32xf32>
    %86 = vector.shape_cast %80 : vector<16x32xf32> to vector<2x8x32xf32>
    %87 = tpu.iota {dimensions = array<i32: 2>} : vector<2x16x128xi32>
    %c64_i32 = arith.constant 64 : i32
    %88 = vector.broadcast %c64_i32 : i32 to vector<2x16x128xi32>
    %89 = arith.cmpi slt, %87, %88 : vector<2x16x128xi32>
    %cst_28 = arith.constant 0.000000e+00 : f32
    %90 = vector.broadcast %cst_28 : f32 to vector<2x16x128xf32>
    %91 = vector.extract_strided_slice %83 {offsets = [0, 0, 0], sizes = [2, 1, 128], strides = [1, 1, 1]} : vector<2x8x128xf32> to vector<2x1x128xf32>
    %92 = vector.shape_cast %91 : vector<2x1x128xf32> to vector<2x128xf32>
    %93 = vector.shape_cast %92 : vector<2x128xf32> to vector<2x1x128xf32>
    %94 = vector.shape_cast %81 : vector<16x128xf32> to vector<1x16x128xf32>
    %95 = vector.broadcast %93 : vector<2x1x128xf32> to vector<2x16x128xf32>
    %96 = vector.broadcast %94 : vector<1x16x128xf32> to vector<2x16x128xf32>
    %97 = arith.mulf %95, %96 : vector<2x16x128xf32>
    %98 = math.exp %97 : vector<2x16x128xf32>
    %99 = vector.extract_strided_slice %85 {offsets = [0, 0, 0], sizes = [2, 1, 16], strides = [1, 1, 1]} : vector<2x8x32xf32> to vector<2x1x16xf32>
    %100 = vector.shape_cast %99 : vector<2x1x16xf32> to vector<2x16xf32>
    %101 = vector.shape_cast %100 : vector<2x16xf32> to vector<2x16x1xf32>
    %102 = vector.extract_strided_slice %85 {offsets = [0, 0, 16], sizes = [2, 1, 16], strides = [1, 1, 1]} : vector<2x8x32xf32> to vector<2x1x16xf32>
    %103 = vector.shape_cast %102 : vector<2x1x16xf32> to vector<2x16xf32>
    %104 = vector.shape_cast %103 : vector<2x16xf32> to vector<2x16x1xf32>
    %105 = vector.shape_cast %101 : vector<2x16x1xf32> to vector<2x16x1xf32>
    %106 = vector.broadcast %105 : vector<2x16x1xf32> to vector<2x16x128xf32>
    %107 = vector.shape_cast %104 : vector<2x16x1xf32> to vector<2x16x1xf32>
    %108 = vector.broadcast %107 : vector<2x16x1xf32> to vector<2x16x128xf32>
    %109 = arith.select %89, %106, %108 : vector<2x16x128xi1>, vector<2x16x128xf32>
    %110 = vector.extract_strided_slice %86 {offsets = [0, 0, 0], sizes = [2, 1, 16], strides = [1, 1, 1]} : vector<2x8x32xf32> to vector<2x1x16xf32>
    %111 = vector.shape_cast %110 : vector<2x1x16xf32> to vector<2x16xf32>
    %112 = vector.shape_cast %111 : vector<2x16xf32> to vector<2x16x1xf32>
    %113 = vector.extract_strided_slice %86 {offsets = [0, 0, 16], sizes = [2, 1, 16], strides = [1, 1, 1]} : vector<2x8x32xf32> to vector<2x1x16xf32>
    %114 = vector.shape_cast %113 : vector<2x1x16xf32> to vector<2x16xf32>
    %115 = vector.shape_cast %114 : vector<2x16xf32> to vector<2x16x1xf32>
    %116 = vector.shape_cast %112 : vector<2x16x1xf32> to vector<2x16x1xf32>
    %117 = vector.broadcast %116 : vector<2x16x1xf32> to vector<2x16x128xf32>
    %118 = vector.shape_cast %115 : vector<2x16x1xf32> to vector<2x16x1xf32>
    %119 = vector.broadcast %118 : vector<2x16x1xf32> to vector<2x16x128xf32>
    %120 = arith.select %89, %117, %119 : vector<2x16x128xi1>, vector<2x16x128xf32>
    %121 = arith.mulf %98, %90 : vector<2x16x128xf32>
    %122 = vector.extract_strided_slice %84 {offsets = [0, 0, 0], sizes = [2, 1, 128], strides = [1, 1, 1]} : vector<2x8x128xf32> to vector<2x1x128xf32>
    %123 = vector.shape_cast %122 : vector<2x1x128xf32> to vector<2x128xf32>
    %124 = vector.shape_cast %123 : vector<2x128xf32> to vector<2x1x128xf32>
    %125 = vector.broadcast %124 : vector<2x1x128xf32> to vector<2x16x128xf32>
    %126 = arith.mulf %125, %109 : vector<2x16x128xf32>
    %127 = arith.addf %121, %126 : vector<2x16x128xf32>
    %128 = arith.mulf %127, %120 : vector<2x16x128xf32>
    %cst_29 = arith.constant dense<0.000000e+00> : vector<2x128xf32>
    %129 = vector.multi_reduction <add>, %128, %cst_29 [1] : vector<2x16x128xf32> to vector<2x128xf32>
    %130 = vector.shape_cast %129 : vector<2x128xf32> to vector<2x1x128xf32>
    %131 = vector.extract_strided_slice %83 {offsets = [0, 1, 0], sizes = [2, 1, 128], strides = [1, 1, 1]} : vector<2x8x128xf32> to vector<2x1x128xf32>
    %132 = vector.shape_cast %131 : vector<2x1x128xf32> to vector<2x128xf32>
    %133 = vector.shape_cast %132 : vector<2x128xf32> to vector<2x1x128xf32>
    %134 = vector.shape_cast %81 : vector<16x128xf32> to vector<1x16x128xf32>
    %135 = vector.broadcast %133 : vector<2x1x128xf32> to vector<2x16x128xf32>
    %136 = vector.broadcast %134 : vector<1x16x128xf32> to vector<2x16x128xf32>
    %137 = arith.mulf %135, %136 : vector<2x16x128xf32>
    %138 = math.exp %137 : vector<2x16x128xf32>
    %139 = vector.extract_strided_slice %85 {offsets = [0, 1, 0], sizes = [2, 1, 16], strides = [1, 1, 1]} : vector<2x8x32xf32> to vector<2x1x16xf32>
    %140 = vector.shape_cast %139 : vector<2x1x16xf32> to vector<2x16xf32>
    %141 = vector.shape_cast %140 : vector<2x16xf32> to vector<2x16x1xf32>
    %142 = vector.extract_strided_slice %85 {offsets = [0, 1, 16], sizes = [2, 1, 16], strides = [1, 1, 1]} : vector<2x8x32xf32> to vector<2x1x16xf32>
    %143 = vector.shape_cast %142 : vector<2x1x16xf32> to vector<2x16xf32>
    %144 = vector.shape_cast %143 : vector<2x16xf32> to vector<2x16x1xf32>
    %145 = vector.shape_cast %141 : vector<2x16x1xf32> to vector<2x16x1xf32>
    %146 = vector.broadcast %145 : vector<2x16x1xf32> to vector<2x16x128xf32>
    %147 = vector.shape_cast %144 : vector<2x16x1xf32> to vector<2x16x1xf32>
    %148 = vector.broadcast %147 : vector<2x16x1xf32> to vector<2x16x128xf32>
    %149 = arith.select %89, %146, %148 : vector<2x16x128xi1>, vector<2x16x128xf32>
    %150 = vector.extract_strided_slice %86 {offsets = [0, 1, 0], sizes = [2, 1, 16], strides = [1, 1, 1]} : vector<2x8x32xf32> to vector<2x1x16xf32>
    %151 = vector.shape_cast %150 : vector<2x1x16xf32> to vector<2x16xf32>
    %152 = vector.shape_cast %151 : vector<2x16xf32> to vector<2x16x1xf32>
    %153 = vector.extract_strided_slice %86 {offsets = [0, 1, 16], sizes = [2, 1, 16], strides = [1, 1, 1]} : vector<2x8x32xf32> to vector<2x1x16xf32>
    %154 = vector.shape_cast %153 : vector<2x1x16xf32> to vector<2x16xf32>
    %155 = vector.shape_cast %154 : vector<2x16xf32> to vector<2x16x1xf32>
    %156 = vector.shape_cast %152 : vector<2x16x1xf32> to vector<2x16x1xf32>
    %157 = vector.broadcast %156 : vector<2x16x1xf32> to vector<2x16x128xf32>
    %158 = vector.shape_cast %155 : vector<2x16x1xf32> to vector<2x16x1xf32>
    %159 = vector.broadcast %158 : vector<2x16x1xf32> to vector<2x16x128xf32>
    %160 = arith.select %89, %157, %159 : vector<2x16x128xi1>, vector<2x16x128xf32>
    %161 = arith.mulf %138, %127 : vector<2x16x128xf32>
    %162 = vector.extract_strided_slice %84 {offsets = [0, 1, 0], sizes = [2, 1, 128], strides = [1, 1, 1]} : vector<2x8x128xf32> to vector<2x1x128xf32>
    %163 = vector.shape_cast %162 : vector<2x1x128xf32> to vector<2x128xf32>
    %164 = vector.shape_cast %163 : vector<2x128xf32> to vector<2x1x128xf32>
    %165 = vector.broadcast %164 : vector<2x1x128xf32> to vector<2x16x128xf32>
    %166 = arith.mulf %165, %149 : vector<2x16x128xf32>
    %167 = arith.addf %161, %166 : vector<2x16x128xf32>
    %168 = arith.mulf %167, %160 : vector<2x16x128xf32>
    %cst_30 = arith.constant dense<0.000000e+00> : vector<2x128xf32>
    %169 = vector.multi_reduction <add>, %168, %cst_30 [1] : vector<2x16x128xf32> to vector<2x128xf32>
    %170 = vector.shape_cast %169 : vector<2x128xf32> to vector<2x1x128xf32>
    %171 = vector.extract_strided_slice %83 {offsets = [0, 2, 0], sizes = [2, 1, 128], strides = [1, 1, 1]} : vector<2x8x128xf32> to vector<2x1x128xf32>
    %172 = vector.shape_cast %171 : vector<2x1x128xf32> to vector<2x128xf32>
    %173 = vector.shape_cast %172 : vector<2x128xf32> to vector<2x1x128xf32>
    %174 = vector.shape_cast %81 : vector<16x128xf32> to vector<1x16x128xf32>
    %175 = vector.broadcast %173 : vector<2x1x128xf32> to vector<2x16x128xf32>
    %176 = vector.broadcast %174 : vector<1x16x128xf32> to vector<2x16x128xf32>
    %177 = arith.mulf %175, %176 : vector<2x16x128xf32>
    %178 = math.exp %177 : vector<2x16x128xf32>
    %179 = vector.extract_strided_slice %85 {offsets = [0, 2, 0], sizes = [2, 1, 16], strides = [1, 1, 1]} : vector<2x8x32xf32> to vector<2x1x16xf32>
    %180 = vector.shape_cast %179 : vector<2x1x16xf32> to vector<2x16xf32>
    %181 = vector.shape_cast %180 : vector<2x16xf32> to vector<2x16x1xf32>
    %182 = vector.extract_strided_slice %85 {offsets = [0, 2, 16], sizes = [2, 1, 16], strides = [1, 1, 1]} : vector<2x8x32xf32> to vector<2x1x16xf32>
    %183 = vector.shape_cast %182 : vector<2x1x16xf32> to vector<2x16xf32>
    %184 = vector.shape_cast %183 : vector<2x16xf32> to vector<2x16x1xf32>
    %185 = vector.shape_cast %181 : vector<2x16x1xf32> to vector<2x16x1xf32>
    %186 = vector.broadcast %185 : vector<2x16x1xf32> to vector<2x16x128xf32>
    %187 = vector.shape_cast %184 : vector<2x16x1xf32> to vector<2x16x1xf32>
    %188 = vector.broadcast %187 : vector<2x16x1xf32> to vector<2x16x128xf32>
    %189 = arith.select %89, %186, %188 : vector<2x16x128xi1>, vector<2x16x128xf32>
    %190 = vector.extract_strided_slice %86 {offsets = [0, 2, 0], sizes = [2, 1, 16], strides = [1, 1, 1]} : vector<2x8x32xf32> to vector<2x1x16xf32>
    %191 = vector.shape_cast %190 : vector<2x1x16xf32> to vector<2x16xf32>
    %192 = vector.shape_cast %191 : vector<2x16xf32> to vector<2x16x1xf32>
    %193 = vector.extract_strided_slice %86 {offsets = [0, 2, 16], sizes = [2, 1, 16], strides = [1, 1, 1]} : vector<2x8x32xf32> to vector<2x1x16xf32>
    %194 = vector.shape_cast %193 : vector<2x1x16xf32> to vector<2x16xf32>
    %195 = vector.shape_cast %194 : vector<2x16xf32> to vector<2x16x1xf32>
    %196 = vector.shape_cast %192 : vector<2x16x1xf32> to vector<2x16x1xf32>
    %197 = vector.broadcast %196 : vector<2x16x1xf32> to vector<2x16x128xf32>
    %198 = vector.shape_cast %195 : vector<2x16x1xf32> to vector<2x16x1xf32>
    %199 = vector.broadcast %198 : vector<2x16x1xf32> to vector<2x16x128xf32>
    %200 = arith.select %89, %197, %199 : vector<2x16x128xi1>, vector<2x16x128xf32>
    %201 = arith.mulf %178, %167 : vector<2x16x128xf32>
    %202 = vector.extract_strided_slice %84 {offsets = [0, 2, 0], sizes = [2, 1, 128], strides = [1, 1, 1]} : vector<2x8x128xf32> to vector<2x1x128xf32>
    %203 = vector.shape_cast %202 : vector<2x1x128xf32> to vector<2x128xf32>
    %204 = vector.shape_cast %203 : vector<2x128xf32> to vector<2x1x128xf32>
    %205 = vector.broadcast %204 : vector<2x1x128xf32> to vector<2x16x128xf32>
    %206 = arith.mulf %205, %189 : vector<2x16x128xf32>
    %207 = arith.addf %201, %206 : vector<2x16x128xf32>
    %208 = arith.mulf %207, %200 : vector<2x16x128xf32>
    %cst_31 = arith.constant dense<0.000000e+00> : vector<2x128xf32>
    %209 = vector.multi_reduction <add>, %208, %cst_31 [1] : vector<2x16x128xf32> to vector<2x128xf32>
    %210 = vector.shape_cast %209 : vector<2x128xf32> to vector<2x1x128xf32>
    %211 = vector.extract_strided_slice %83 {offsets = [0, 3, 0], sizes = [2, 1, 128], strides = [1, 1, 1]} : vector<2x8x128xf32> to vector<2x1x128xf32>
    %212 = vector.shape_cast %211 : vector<2x1x128xf32> to vector<2x128xf32>
    %213 = vector.shape_cast %212 : vector<2x128xf32> to vector<2x1x128xf32>
    %214 = vector.shape_cast %81 : vector<16x128xf32> to vector<1x16x128xf32>
    %215 = vector.broadcast %213 : vector<2x1x128xf32> to vector<2x16x128xf32>
    %216 = vector.broadcast %214 : vector<1x16x128xf32> to vector<2x16x128xf32>
    %217 = arith.mulf %215, %216 : vector<2x16x128xf32>
    %218 = math.exp %217 : vector<2x16x128xf32>
    %219 = vector.extract_strided_slice %85 {offsets = [0, 3, 0], sizes = [2, 1, 16], strides = [1, 1, 1]} : vector<2x8x32xf32> to vector<2x1x16xf32>
    %220 = vector.shape_cast %219 : vector<2x1x16xf32> to vector<2x16xf32>
    %221 = vector.shape_cast %220 : vector<2x16xf32> to vector<2x16x1xf32>
    %222 = vector.extract_strided_slice %85 {offsets = [0, 3, 16], sizes = [2, 1, 16], strides = [1, 1, 1]} : vector<2x8x32xf32> to vector<2x1x16xf32>
    %223 = vector.shape_cast %222 : vector<2x1x16xf32> to vector<2x16xf32>
    %224 = vector.shape_cast %223 : vector<2x16xf32> to vector<2x16x1xf32>
    %225 = vector.shape_cast %221 : vector<2x16x1xf32> to vector<2x16x1xf32>
    %226 = vector.broadcast %225 : vector<2x16x1xf32> to vector<2x16x128xf32>
    %227 = vector.shape_cast %224 : vector<2x16x1xf32> to vector<2x16x1xf32>
    %228 = vector.broadcast %227 : vector<2x16x1xf32> to vector<2x16x128xf32>
    %229 = arith.select %89, %226, %228 : vector<2x16x128xi1>, vector<2x16x128xf32>
    %230 = vector.extract_strided_slice %86 {offsets = [0, 3, 0], sizes = [2, 1, 16], strides = [1, 1, 1]} : vector<2x8x32xf32> to vector<2x1x16xf32>
    %231 = vector.shape_cast %230 : vector<2x1x16xf32> to vector<2x16xf32>
    %232 = vector.shape_cast %231 : vector<2x16xf32> to vector<2x16x1xf32>
    %233 = vector.extract_strided_slice %86 {offsets = [0, 3, 16], sizes = [2, 1, 16], strides = [1, 1, 1]} : vector<2x8x32xf32> to vector<2x1x16xf32>
    %234 = vector.shape_cast %233 : vector<2x1x16xf32> to vector<2x16xf32>
    %235 = vector.shape_cast %234 : vector<2x16xf32> to vector<2x16x1xf32>
    %236 = vector.shape_cast %232 : vector<2x16x1xf32> to vector<2x16x1xf32>
    %237 = vector.broadcast %236 : vector<2x16x1xf32> to vector<2x16x128xf32>
    %238 = vector.shape_cast %235 : vector<2x16x1xf32> to vector<2x16x1xf32>
    %239 = vector.broadcast %238 : vector<2x16x1xf32> to vector<2x16x128xf32>
    %240 = arith.select %89, %237, %239 : vector<2x16x128xi1>, vector<2x16x128xf32>
    %241 = arith.mulf %218, %207 : vector<2x16x128xf32>
    %242 = vector.extract_strided_slice %84 {offsets = [0, 3, 0], sizes = [2, 1, 128], strides = [1, 1, 1]} : vector<2x8x128xf32> to vector<2x1x128xf32>
    %243 = vector.shape_cast %242 : vector<2x1x128xf32> to vector<2x128xf32>
    %244 = vector.shape_cast %243 : vector<2x128xf32> to vector<2x1x128xf32>
    %245 = vector.broadcast %244 : vector<2x1x128xf32> to vector<2x16x128xf32>
    %246 = arith.mulf %245, %229 : vector<2x16x128xf32>
    %247 = arith.addf %241, %246 : vector<2x16x128xf32>
    %248 = arith.mulf %247, %240 : vector<2x16x128xf32>
    %cst_32 = arith.constant dense<0.000000e+00> : vector<2x128xf32>
    %249 = vector.multi_reduction <add>, %248, %cst_32 [1] : vector<2x16x128xf32> to vector<2x128xf32>
    %250 = vector.shape_cast %249 : vector<2x128xf32> to vector<2x1x128xf32>
    %251 = vector.extract_strided_slice %83 {offsets = [0, 4, 0], sizes = [2, 1, 128], strides = [1, 1, 1]} : vector<2x8x128xf32> to vector<2x1x128xf32>
    %252 = vector.shape_cast %251 : vector<2x1x128xf32> to vector<2x128xf32>
    %253 = vector.shape_cast %252 : vector<2x128xf32> to vector<2x1x128xf32>
    %254 = vector.shape_cast %81 : vector<16x128xf32> to vector<1x16x128xf32>
    %255 = vector.broadcast %253 : vector<2x1x128xf32> to vector<2x16x128xf32>
    %256 = vector.broadcast %254 : vector<1x16x128xf32> to vector<2x16x128xf32>
    %257 = arith.mulf %255, %256 : vector<2x16x128xf32>
    %258 = math.exp %257 : vector<2x16x128xf32>
    %259 = vector.extract_strided_slice %85 {offsets = [0, 4, 0], sizes = [2, 1, 16], strides = [1, 1, 1]} : vector<2x8x32xf32> to vector<2x1x16xf32>
    %260 = vector.shape_cast %259 : vector<2x1x16xf32> to vector<2x16xf32>
    %261 = vector.shape_cast %260 : vector<2x16xf32> to vector<2x16x1xf32>
    %262 = vector.extract_strided_slice %85 {offsets = [0, 4, 16], sizes = [2, 1, 16], strides = [1, 1, 1]} : vector<2x8x32xf32> to vector<2x1x16xf32>
    %263 = vector.shape_cast %262 : vector<2x1x16xf32> to vector<2x16xf32>
    %264 = vector.shape_cast %263 : vector<2x16xf32> to vector<2x16x1xf32>
    %265 = vector.shape_cast %261 : vector<2x16x1xf32> to vector<2x16x1xf32>
    %266 = vector.broadcast %265 : vector<2x16x1xf32> to vector<2x16x128xf32>
    %267 = vector.shape_cast %264 : vector<2x16x1xf32> to vector<2x16x1xf32>
    %268 = vector.broadcast %267 : vector<2x16x1xf32> to vector<2x16x128xf32>
    %269 = arith.select %89, %266, %268 : vector<2x16x128xi1>, vector<2x16x128xf32>
    %270 = vector.extract_strided_slice %86 {offsets = [0, 4, 0], sizes = [2, 1, 16], strides = [1, 1, 1]} : vector<2x8x32xf32> to vector<2x1x16xf32>
    %271 = vector.shape_cast %270 : vector<2x1x16xf32> to vector<2x16xf32>
    %272 = vector.shape_cast %271 : vector<2x16xf32> to vector<2x16x1xf32>
    %273 = vector.extract_strided_slice %86 {offsets = [0, 4, 16], sizes = [2, 1, 16], strides = [1, 1, 1]} : vector<2x8x32xf32> to vector<2x1x16xf32>
    %274 = vector.shape_cast %273 : vector<2x1x16xf32> to vector<2x16xf32>
    %275 = vector.shape_cast %274 : vector<2x16xf32> to vector<2x16x1xf32>
    %276 = vector.shape_cast %272 : vector<2x16x1xf32> to vector<2x16x1xf32>
    %277 = vector.broadcast %276 : vector<2x16x1xf32> to vector<2x16x128xf32>
    %278 = vector.shape_cast %275 : vector<2x16x1xf32> to vector<2x16x1xf32>
    %279 = vector.broadcast %278 : vector<2x16x1xf32> to vector<2x16x128xf32>
    %280 = arith.select %89, %277, %279 : vector<2x16x128xi1>, vector<2x16x128xf32>
    %281 = arith.mulf %258, %247 : vector<2x16x128xf32>
    %282 = vector.extract_strided_slice %84 {offsets = [0, 4, 0], sizes = [2, 1, 128], strides = [1, 1, 1]} : vector<2x8x128xf32> to vector<2x1x128xf32>
    %283 = vector.shape_cast %282 : vector<2x1x128xf32> to vector<2x128xf32>
    %284 = vector.shape_cast %283 : vector<2x128xf32> to vector<2x1x128xf32>
    %285 = vector.broadcast %284 : vector<2x1x128xf32> to vector<2x16x128xf32>
    %286 = arith.mulf %285, %269 : vector<2x16x128xf32>
    %287 = arith.addf %281, %286 : vector<2x16x128xf32>
    %288 = arith.mulf %287, %280 : vector<2x16x128xf32>
    %cst_33 = arith.constant dense<0.000000e+00> : vector<2x128xf32>
    %289 = vector.multi_reduction <add>, %288, %cst_33 [1] : vector<2x16x128xf32> to vector<2x128xf32>
    %290 = vector.shape_cast %289 : vector<2x128xf32> to vector<2x1x128xf32>
    %291 = vector.extract_strided_slice %83 {offsets = [0, 5, 0], sizes = [2, 1, 128], strides = [1, 1, 1]} : vector<2x8x128xf32> to vector<2x1x128xf32>
    %292 = vector.shape_cast %291 : vector<2x1x128xf32> to vector<2x128xf32>
    %293 = vector.shape_cast %292 : vector<2x128xf32> to vector<2x1x128xf32>
    %294 = vector.shape_cast %81 : vector<16x128xf32> to vector<1x16x128xf32>
    %295 = vector.broadcast %293 : vector<2x1x128xf32> to vector<2x16x128xf32>
    %296 = vector.broadcast %294 : vector<1x16x128xf32> to vector<2x16x128xf32>
    %297 = arith.mulf %295, %296 : vector<2x16x128xf32>
    %298 = math.exp %297 : vector<2x16x128xf32>
    %299 = vector.extract_strided_slice %85 {offsets = [0, 5, 0], sizes = [2, 1, 16], strides = [1, 1, 1]} : vector<2x8x32xf32> to vector<2x1x16xf32>
    %300 = vector.shape_cast %299 : vector<2x1x16xf32> to vector<2x16xf32>
    %301 = vector.shape_cast %300 : vector<2x16xf32> to vector<2x16x1xf32>
    %302 = vector.extract_strided_slice %85 {offsets = [0, 5, 16], sizes = [2, 1, 16], strides = [1, 1, 1]} : vector<2x8x32xf32> to vector<2x1x16xf32>
    %303 = vector.shape_cast %302 : vector<2x1x16xf32> to vector<2x16xf32>
    %304 = vector.shape_cast %303 : vector<2x16xf32> to vector<2x16x1xf32>
    %305 = vector.shape_cast %301 : vector<2x16x1xf32> to vector<2x16x1xf32>
    %306 = vector.broadcast %305 : vector<2x16x1xf32> to vector<2x16x128xf32>
    %307 = vector.shape_cast %304 : vector<2x16x1xf32> to vector<2x16x1xf32>
    %308 = vector.broadcast %307 : vector<2x16x1xf32> to vector<2x16x128xf32>
    %309 = arith.select %89, %306, %308 : vector<2x16x128xi1>, vector<2x16x128xf32>
    %310 = vector.extract_strided_slice %86 {offsets = [0, 5, 0], sizes = [2, 1, 16], strides = [1, 1, 1]} : vector<2x8x32xf32> to vector<2x1x16xf32>
    %311 = vector.shape_cast %310 : vector<2x1x16xf32> to vector<2x16xf32>
    %312 = vector.shape_cast %311 : vector<2x16xf32> to vector<2x16x1xf32>
    %313 = vector.extract_strided_slice %86 {offsets = [0, 5, 16], sizes = [2, 1, 16], strides = [1, 1, 1]} : vector<2x8x32xf32> to vector<2x1x16xf32>
    %314 = vector.shape_cast %313 : vector<2x1x16xf32> to vector<2x16xf32>
    %315 = vector.shape_cast %314 : vector<2x16xf32> to vector<2x16x1xf32>
    %316 = vector.shape_cast %312 : vector<2x16x1xf32> to vector<2x16x1xf32>
    %317 = vector.broadcast %316 : vector<2x16x1xf32> to vector<2x16x128xf32>
    %318 = vector.shape_cast %315 : vector<2x16x1xf32> to vector<2x16x1xf32>
    %319 = vector.broadcast %318 : vector<2x16x1xf32> to vector<2x16x128xf32>
    %320 = arith.select %89, %317, %319 : vector<2x16x128xi1>, vector<2x16x128xf32>
    %321 = arith.mulf %298, %287 : vector<2x16x128xf32>
    %322 = vector.extract_strided_slice %84 {offsets = [0, 5, 0], sizes = [2, 1, 128], strides = [1, 1, 1]} : vector<2x8x128xf32> to vector<2x1x128xf32>
    %323 = vector.shape_cast %322 : vector<2x1x128xf32> to vector<2x128xf32>
    %324 = vector.shape_cast %323 : vector<2x128xf32> to vector<2x1x128xf32>
    %325 = vector.broadcast %324 : vector<2x1x128xf32> to vector<2x16x128xf32>
    %326 = arith.mulf %325, %309 : vector<2x16x128xf32>
    %327 = arith.addf %321, %326 : vector<2x16x128xf32>
    %328 = arith.mulf %327, %320 : vector<2x16x128xf32>
    %cst_34 = arith.constant dense<0.000000e+00> : vector<2x128xf32>
    %329 = vector.multi_reduction <add>, %328, %cst_34 [1] : vector<2x16x128xf32> to vector<2x128xf32>
    %330 = vector.shape_cast %329 : vector<2x128xf32> to vector<2x1x128xf32>
    %331 = vector.extract_strided_slice %83 {offsets = [0, 6, 0], sizes = [2, 1, 128], strides = [1, 1, 1]} : vector<2x8x128xf32> to vector<2x1x128xf32>
    %332 = vector.shape_cast %331 : vector<2x1x128xf32> to vector<2x128xf32>
    %333 = vector.shape_cast %332 : vector<2x128xf32> to vector<2x1x128xf32>
    %334 = vector.shape_cast %81 : vector<16x128xf32> to vector<1x16x128xf32>
    %335 = vector.broadcast %333 : vector<2x1x128xf32> to vector<2x16x128xf32>
    %336 = vector.broadcast %334 : vector<1x16x128xf32> to vector<2x16x128xf32>
    %337 = arith.mulf %335, %336 : vector<2x16x128xf32>
    %338 = math.exp %337 : vector<2x16x128xf32>
    %339 = vector.extract_strided_slice %85 {offsets = [0, 6, 0], sizes = [2, 1, 16], strides = [1, 1, 1]} : vector<2x8x32xf32> to vector<2x1x16xf32>
    %340 = vector.shape_cast %339 : vector<2x1x16xf32> to vector<2x16xf32>
    %341 = vector.shape_cast %340 : vector<2x16xf32> to vector<2x16x1xf32>
    %342 = vector.extract_strided_slice %85 {offsets = [0, 6, 16], sizes = [2, 1, 16], strides = [1, 1, 1]} : vector<2x8x32xf32> to vector<2x1x16xf32>
    %343 = vector.shape_cast %342 : vector<2x1x16xf32> to vector<2x16xf32>
    %344 = vector.shape_cast %343 : vector<2x16xf32> to vector<2x16x1xf32>
    %345 = vector.shape_cast %341 : vector<2x16x1xf32> to vector<2x16x1xf32>
    %346 = vector.broadcast %345 : vector<2x16x1xf32> to vector<2x16x128xf32>
    %347 = vector.shape_cast %344 : vector<2x16x1xf32> to vector<2x16x1xf32>
    %348 = vector.broadcast %347 : vector<2x16x1xf32> to vector<2x16x128xf32>
    %349 = arith.select %89, %346, %348 : vector<2x16x128xi1>, vector<2x16x128xf32>
    %350 = vector.extract_strided_slice %86 {offsets = [0, 6, 0], sizes = [2, 1, 16], strides = [1, 1, 1]} : vector<2x8x32xf32> to vector<2x1x16xf32>
    %351 = vector.shape_cast %350 : vector<2x1x16xf32> to vector<2x16xf32>
    %352 = vector.shape_cast %351 : vector<2x16xf32> to vector<2x16x1xf32>
    %353 = vector.extract_strided_slice %86 {offsets = [0, 6, 16], sizes = [2, 1, 16], strides = [1, 1, 1]} : vector<2x8x32xf32> to vector<2x1x16xf32>
    %354 = vector.shape_cast %353 : vector<2x1x16xf32> to vector<2x16xf32>
    %355 = vector.shape_cast %354 : vector<2x16xf32> to vector<2x16x1xf32>
    %356 = vector.shape_cast %352 : vector<2x16x1xf32> to vector<2x16x1xf32>
    %357 = vector.broadcast %356 : vector<2x16x1xf32> to vector<2x16x128xf32>
    %358 = vector.shape_cast %355 : vector<2x16x1xf32> to vector<2x16x1xf32>
    %359 = vector.broadcast %358 : vector<2x16x1xf32> to vector<2x16x128xf32>
    %360 = arith.select %89, %357, %359 : vector<2x16x128xi1>, vector<2x16x128xf32>
    %361 = arith.mulf %338, %327 : vector<2x16x128xf32>
    %362 = vector.extract_strided_slice %84 {offsets = [0, 6, 0], sizes = [2, 1, 128], strides = [1, 1, 1]} : vector<2x8x128xf32> to vector<2x1x128xf32>
    %363 = vector.shape_cast %362 : vector<2x1x128xf32> to vector<2x128xf32>
    %364 = vector.shape_cast %363 : vector<2x128xf32> to vector<2x1x128xf32>
    %365 = vector.broadcast %364 : vector<2x1x128xf32> to vector<2x16x128xf32>
    %366 = arith.mulf %365, %349 : vector<2x16x128xf32>
    %367 = arith.addf %361, %366 : vector<2x16x128xf32>
    %368 = arith.mulf %367, %360 : vector<2x16x128xf32>
    %cst_35 = arith.constant dense<0.000000e+00> : vector<2x128xf32>
    %369 = vector.multi_reduction <add>, %368, %cst_35 [1] : vector<2x16x128xf32> to vector<2x128xf32>
    %370 = vector.shape_cast %369 : vector<2x128xf32> to vector<2x1x128xf32>
    %371 = vector.extract_strided_slice %83 {offsets = [0, 7, 0], sizes = [2, 1, 128], strides = [1, 1, 1]} : vector<2x8x128xf32> to vector<2x1x128xf32>
    %372 = vector.shape_cast %371 : vector<2x1x128xf32> to vector<2x128xf32>
    %373 = vector.shape_cast %372 : vector<2x128xf32> to vector<2x1x128xf32>
    %374 = vector.shape_cast %81 : vector<16x128xf32> to vector<1x16x128xf32>
    %375 = vector.broadcast %373 : vector<2x1x128xf32> to vector<2x16x128xf32>
    %376 = vector.broadcast %374 : vector<1x16x128xf32> to vector<2x16x128xf32>
    %377 = arith.mulf %375, %376 : vector<2x16x128xf32>
    %378 = math.exp %377 : vector<2x16x128xf32>
    %379 = vector.extract_strided_slice %85 {offsets = [0, 7, 0], sizes = [2, 1, 16], strides = [1, 1, 1]} : vector<2x8x32xf32> to vector<2x1x16xf32>
    %380 = vector.shape_cast %379 : vector<2x1x16xf32> to vector<2x16xf32>
    %381 = vector.shape_cast %380 : vector<2x16xf32> to vector<2x16x1xf32>
    %382 = vector.extract_strided_slice %85 {offsets = [0, 7, 16], sizes = [2, 1, 16], strides = [1, 1, 1]} : vector<2x8x32xf32> to vector<2x1x16xf32>
    %383 = vector.shape_cast %382 : vector<2x1x16xf32> to vector<2x16xf32>
    %384 = vector.shape_cast %383 : vector<2x16xf32> to vector<2x16x1xf32>
    %385 = vector.shape_cast %381 : vector<2x16x1xf32> to vector<2x16x1xf32>
    %386 = vector.broadcast %385 : vector<2x16x1xf32> to vector<2x16x128xf32>
    %387 = vector.shape_cast %384 : vector<2x16x1xf32> to vector<2x16x1xf32>
    %388 = vector.broadcast %387 : vector<2x16x1xf32> to vector<2x16x128xf32>
    %389 = arith.select %89, %386, %388 : vector<2x16x128xi1>, vector<2x16x128xf32>
    %390 = vector.extract_strided_slice %86 {offsets = [0, 7, 0], sizes = [2, 1, 16], strides = [1, 1, 1]} : vector<2x8x32xf32> to vector<2x1x16xf32>
    %391 = vector.shape_cast %390 : vector<2x1x16xf32> to vector<2x16xf32>
    %392 = vector.shape_cast %391 : vector<2x16xf32> to vector<2x16x1xf32>
    %393 = vector.extract_strided_slice %86 {offsets = [0, 7, 16], sizes = [2, 1, 16], strides = [1, 1, 1]} : vector<2x8x32xf32> to vector<2x1x16xf32>
    %394 = vector.shape_cast %393 : vector<2x1x16xf32> to vector<2x16xf32>
    %395 = vector.shape_cast %394 : vector<2x16xf32> to vector<2x16x1xf32>
    %396 = vector.shape_cast %392 : vector<2x16x1xf32> to vector<2x16x1xf32>
    %397 = vector.broadcast %396 : vector<2x16x1xf32> to vector<2x16x128xf32>
    %398 = vector.shape_cast %395 : vector<2x16x1xf32> to vector<2x16x1xf32>
    %399 = vector.broadcast %398 : vector<2x16x1xf32> to vector<2x16x128xf32>
    %400 = arith.select %89, %397, %399 : vector<2x16x128xi1>, vector<2x16x128xf32>
    %401 = arith.mulf %378, %367 : vector<2x16x128xf32>
    %402 = vector.extract_strided_slice %84 {offsets = [0, 7, 0], sizes = [2, 1, 128], strides = [1, 1, 1]} : vector<2x8x128xf32> to vector<2x1x128xf32>
    %403 = vector.shape_cast %402 : vector<2x1x128xf32> to vector<2x128xf32>
    %404 = vector.shape_cast %403 : vector<2x128xf32> to vector<2x1x128xf32>
    %405 = vector.broadcast %404 : vector<2x1x128xf32> to vector<2x16x128xf32>
    %406 = arith.mulf %405, %389 : vector<2x16x128xf32>
    %407 = arith.addf %401, %406 : vector<2x16x128xf32>
    %408 = arith.mulf %407, %400 : vector<2x16x128xf32>
    %cst_36 = arith.constant dense<0.000000e+00> : vector<2x128xf32>
    %409 = vector.multi_reduction <add>, %408, %cst_36 [1] : vector<2x16x128xf32> to vector<2x128xf32>
    %410 = vector.shape_cast %409 : vector<2x128xf32> to vector<2x1x128xf32>
    %411 = tpu.concatenate %130, %170, %210, %250, %290, %330, %370, %410 in 1 : vector<2x1x128xf32>, vector<2x1x128xf32>, vector<2x1x128xf32>, vector<2x1x128xf32>, vector<2x1x128xf32>, vector<2x1x128xf32>, vector<2x1x128xf32>, vector<2x1x128xf32> -> vector<2x8x128xf32>
    %412 = vector.shape_cast %411 : vector<2x8x128xf32> to vector<16x128xf32>
    %c6 = arith.constant 6 : index
    %c0_37 = arith.constant 0 : index
    %413 = vector.load %arg4[%c6, %c0_37] : memref<24x128xf32, #tpu.memory_space<vmem>>, vector<1x128xf32>
    %414 = vector.broadcast %413 : vector<1x128xf32> to vector<16x128xf32>
    %415 = arith.mulf %414, %58 : vector<16x128xf32>
    %416 = arith.addf %412, %415 : vector<16x128xf32>
    %417 = arith.negf %15 : vector<16x128xf32>
    %418 = math.exp %417 : vector<16x128xf32>
    %cst_38 = arith.constant 1.000000e+00 : f32
    %419 = vector.broadcast %cst_38 : f32 to vector<16x128xf32>
    %420 = arith.addf %419, %418 : vector<16x128xf32>
    %421 = arith.divf %419, %420 : vector<16x128xf32>
    %422 = arith.mulf %15, %421 : vector<16x128xf32>
    %423 = arith.mulf %416, %422 : vector<16x128xf32>
    %c0_39 = arith.constant 0 : index
    %c256 = arith.constant 256 : index
    %424 = vector.load %arg3[%c0_39, %c256] : memref<128x384xf32, #tpu.memory_space<vmem>>, vector<128x128xf32>
    %cst_40 = arith.constant dense<0.000000e+00> : vector<16x128xf32>
    %425 = tpu.matmul %423, %424, %cst_40 {dimension_numbers = #tpu.dot_dimension_numbers<[1], [0], [0], [1], [0, 0, 1, 1], [], []>} : vector<16x128xf32>, vector<128x128xf32>, vector<16x128xf32> -> vector<16x128xf32>
    %426 = vector.extract_strided_slice %425 {offsets = [0, 0], sizes = [16, 32], strides = [1, 1]} : vector<16x128xf32> to vector<16x32xf32>
    %427 = arith.addf %426, %1 : vector<16x32xf32>
    %428 = vector.extract_strided_slice %425 {offsets = [0, 32], sizes = [16, 32], strides = [1, 1]} : vector<16x128xf32> to vector<16x32xf32>
    %429 = arith.addf %428, %1 : vector<16x32xf32>
    %430 = arith.mulf %427, %429 : vector<16x32xf32>
    %431 = vector.shape_cast %430 : vector<16x32xf32> to vector<2x8x32xf32>
    %c0_41 = arith.constant 0 : index
    %c0_42 = arith.constant 0 : index
    %c0_43 = arith.constant 0 : index
    %432 = vector.load %arg5[%c0_41, %c0_42, %c0_43] : memref<2x8x32xf32, #tpu.memory_space<vmem>>, vector<2x8x32xf32>
    tpu.vector_store %arg5[%c0_41, %c0_42, %c0_43], %431 {strides = array<i32>} : memref<2x8x32xf32, #tpu.memory_space<vmem>>, vector<2x8x32xf32>,
    return
  }
  func.func @transform_0(%arg0: i32) -> (i32, i32, i32) {
    %c0_i32 = arith.constant 0 : i32
    %c0_i32_0 = arith.constant 0 : i32
    %c0_i32_1 = arith.constant 0 : i32
    return %arg0, %c0_i32, %c0_i32_0 : i32, i32, i32
  }
  func.func @transform_1(%arg0: i32) -> (i32, i32) {
    %c0_i32 = arith.constant 0 : i32
    %c0_i32_0 = arith.constant 0 : i32
    %c0_i32_1 = arith.constant 0 : i32
    return %c0_i32, %c0_i32_0 : i32, i32
  }
  func.func @transform_2(%arg0: i32) -> (i32, i32) {
    %c0_i32 = arith.constant 0 : i32
    %c0_i32_0 = arith.constant 0 : i32
    %c0_i32_1 = arith.constant 0 : i32
    return %c0_i32, %c0_i32_0 : i32, i32
  }
  func.func @transform_3(%arg0: i32) -> (i32, i32) {
    %c0_i32 = arith.constant 0 : i32
    %c0_i32_0 = arith.constant 0 : i32
    %c0_i32_1 = arith.constant 0 : i32
    return %c0_i32, %c0_i32_0 : i32, i32
  }
  func.func @transform_4(%arg0: i32) -> (i32, i32, i32) {
    %c0_i32 = arith.constant 0 : i32
    %c0_i32_0 = arith.constant 0 : i32
    %c0_i32_1 = arith.constant 0 : i32
    return %arg0, %c0_i32, %c0_i32_0 : i32, i32, i32
  }
}

</mosaic_0001>

<bundles_post_ra>
// kernel: tpu_custom_call.1
= control target key start
LH: loop header
LB: loop body
LE: loop exit
PB: predicated region body
PF: predicated region fallthrough
CT: control target
= control target key end

     0   :  { %9 = vsyncpa [#allocation3], 0  ;;  %s2954_s0 = inlined_call_operand.hbm [shape: f32[2,8,32], index: 0, kind: input, shape index: {}]   ;;  %s2955_s1 = inlined_call_operand.hbm [shape: f32[32,256], index: 1, kind: input, shape index: {}]   ;;  %s2956_s2 = inlined_call_operand.hbm [shape: f32[128,384], index: 2, kind: input, shape index: {}]   ;;  %s2957_s3 = inlined_call_operand.hbm [shape: f32[24,128], index: 3, kind: input, shape index: {}]   ;;  %s2958_s4 = inlined_call_operand.hbm [shape: f32[2,8,32], index: 4, kind: output, shape index: {}]  }
   0x1   :  { %10 = vsyncpa [#allocation6], 0 }
   0x2   :  { %11 = vsyncpa [#allocation9], 0 }
   0x3   :  { %12 = vsyncpa [#allocation4], 0  ;;  %s2057_s15 = smov [#allocation5]   ;;  %s1939_s19 = scalar_lea.hbm %s2955_s1, 1024 }
   0x4   :  { %s30_s16 = sshll.u32 %s2057_s15, 4  ;;  %p1940_p0 = scmp.ne.s32.totalorder %s2955_s1, %s1939_s19  ;;  %s31_s16 = int_to_ptr.vmem [resolvable:$true] %s30_s16 }
   0x5   :  { %p1943_p1 = scmp.lt.u32.totalorder %s1939_s19, %s2955_s1 }
   0x7   :  { %p1945_p2 = pnand %p1943_p1, %p1940_p0 }
   0x9   :  { %1948 = shalt.err (!%p1945_p2)
}
   0xa   :  { %s1949_s24 = scalar_lea.vmem %s31_s16, 1024  ;;  %p1954_p4 = scmp.lt.s32.totalorder %s31_s16, %s31_s16 }
   0xb   :  { %p1950_p3 = scmp.ne.s32.totalorder %s31_s16, %s1949_s24  ;;  %p1955_p5 = scmp.lt.s32.totalorder %s1949_s24, %s1949_s24 }
   0xd   :  { %p1956_p6 = por %p1955_p5, %p1954_p4 }
   0xf   :  { %p1957_p7 = pnand %p1956_p6, %p1950_p3 }
  0x11   :  { %1960 = shalt.err (!%p1957_p7)
}
  0x12   :  { %s2058_s25 = smov 256   ;;  %s2059_s26 = smov 16  }
  0x13   :  { %36 = dma.hbm_to_vmem [thread:$0]  %s2955_s1, 1024, %s31_s16, [#allocation6], %s2058_s25, %s2058_s25, %s2059_s26  }
  0x14   :  { %s2060_s29 = smov [#allocation2]   ;;  %s1961_s7 = scalar_lea.hbm %s2954_s0, 256 }
  0x15   :  { %s18_s30 = sshll.u32 %s2060_s29, 4  ;;  %p1962_p8 = scmp.ne.s32.totalorder %s2954_s0, %s1961_s7  ;;  %s19_s30 = int_to_ptr.vmem [resolvable:$true] %s18_s30 }
  0x16   :  { %p1965_p9 = scmp.lt.u32.totalorder %s1961_s7, %s2954_s0 }
  0x18   :  { %p1967_p10 = pnand %p1965_p9, %p1962_p8 }
  0x1a   :  { %1970 = shalt.err (!%p1967_p10)
}
  0x1b   :  { %s1971_s12 = scalar_lea.vmem %s19_s30, 256  ;;  %p1976_p12 = scmp.lt.s32.totalorder %s19_s30, %s19_s30 }
  0x1c   :  { %p1972_p11 = scmp.ne.s32.totalorder %s19_s30, %s1971_s12  ;;  %p1977_p13 = scmp.lt.s32.totalorder %s1971_s12, %s1971_s12 }
  0x1e   :  { %p1978_p0 = por %p1977_p13, %p1976_p12 }
  0x20   :  { %p1979_p1 = pnand %p1978_p0, %p1972_p11 }
  0x22   :  { %1982 = shalt.err (!%p1979_p1)
}
  0x23   :  { %s2061_s1 = smov 128   ;;  %s2062_s13 = smov 8  }
  0x24   :  { %24 = dma.hbm_to_vmem [thread:$0]  %s2954_s0, 256, %s19_s30, [#allocation3], %s2061_s1, %s2061_s1, %s2062_s13  }
  0x25   :  { %s2063_s16 = smov [#allocation7]   ;;  %s1983_s20 = scalar_lea.hbm %s2956_s2, 6144 }
  0x26   :  { %s42_s17 = sshll.u32 %s2063_s16, 4  ;;  %p1984_p2 = scmp.ne.s32.totalorder %s2956_s2, %s1983_s20  ;;  %s43_s17 = int_to_ptr.vmem [resolvable:$true] %s42_s17 }
  0x27   :  { %p1987_p3 = scmp.lt.u32.totalorder %s1983_s20, %s2956_s2 }
  0x29   :  { %p1989_p4 = pnand %p1987_p3, %p1984_p2 }
  0x2b   :  { %1992 = shalt.err (!%p1989_p4)
}
  0x2c   :  { %s1993_s25 = scalar_lea.vmem %s43_s17, 6144  ;;  %p1998_p6 = scmp.lt.s32.totalorder %s43_s17, %s43_s17 }
  0x2d   :  { %p1994_p5 = scmp.ne.s32.totalorder %s43_s17, %s1993_s25  ;;  %p1999_p7 = scmp.lt.s32.totalorder %s1993_s25, %s1993_s25 }
  0x2f   :  { %p2000_p8 = por %p1999_p7, %p1998_p6 }
  0x31   :  { %p2001_p9 = pnand %p2000_p8, %p1994_p5 }
  0x33   :  { %2004 = shalt.err (!%p2001_p9)
}
  0x34   :  { %s2064_s0 = smov 384   ;;  %s2065_s26 = smov 24  }
  0x35   :  { %48 = dma.hbm_to_vmem [thread:$0]  %s2956_s2, 6144, %s43_s17, [#allocation6], %s2064_s0, %s2064_s0, %s2065_s26  }
  0x36   :  { %s2066_s29 = smov [#allocation8]   ;;  %s2005_s7 = scalar_lea.hbm %s2957_s3, 384 }
  0x37   :  { %s54_s30 = sshll.u32 %s2066_s29, 4  ;;  %p2006_p10 = scmp.ne.s32.totalorder %s2957_s3, %s2005_s7  ;;  %s55_s30 = int_to_ptr.vmem [resolvable:$true] %s54_s30 }
  0x38   :  { %p2009_p11 = scmp.lt.u32.totalorder %s2005_s7, %s2957_s3 }
  0x3a   :  { %p2011_p12 = pnand %p2009_p11, %p2006_p10 }
  0x3c   :  { %2014 = shalt.err (!%p2011_p12)
}
  0x3d   :  { %s2015_s12 = scalar_lea.vmem %s55_s30, 384  ;;  %p2020_p0 = scmp.lt.s32.totalorder %s55_s30, %s55_s30 }
  0x3e   :  { %p2016_p13 = scmp.ne.s32.totalorder %s55_s30, %s2015_s12  ;;  %p2021_p1 = scmp.lt.s32.totalorder %s2015_s12, %s2015_s12 }
  0x40   :  { %p2022_p2 = por %p2021_p1, %p2020_p0 }
  0x42   :  { %p2023_p3 = pnand %p2022_p2, %p2016_p13 }
  0x44   :  { %2026 = shalt.err (!%p2023_p3)
}
  0x45   :  { %60 = dma.hbm_to_vmem [thread:$0]  %s2957_s3, 384, %s55_s30, [#allocation9], %s2061_s1, %s2061_s1, %s2062_s13  }
  0x46   :  { %2049 = dma.done.wait [#allocation3], 256  }
  0x47   :  { %2050 = vsyncadd [#allocation3], 4294967040 }
  0x48   :  { %2051 = dma.done.wait [#allocation6], 7168  }
  0x49   :  { %2052 = vsyncadd [#allocation6], 4294960128 }
  0x4a   :  { %2053 = dma.done.wait [#allocation9], 384  }
  0x4b   :  { %2054 = vsyncadd [#allocation9], 4294966912  ;;  %v73_v0 = vld [vmem:[#allocation2] sm:$0xff]  ;;  %vm77_vm0 = vcmask 261120   ;;  %v74_v1 = vld [vmem:[#allocation2 + $0x8] sm:$0xff]  ;;  %v2067_v17 = vmov 0.0  }
  0x4c   :  { %v75_v2 = vmul.f32 %v73_v0, %v73_v0  ;;  %v76_v3 = vmul.f32 %v74_v1, %v74_v1  ;;  %v94_v6 = vld [vmem:[#allocation5 + $0x8] sm:$0xff]  ;;  %v96_v7 = vld [vmem:[#allocation5 + $0x18] sm:$0xff]  ;;  %v93_v9 = vld [vmem:[#allocation5] sm:$0xff]  ;;  %171 = vmatprep.mubr.f32.mxu0 %v2067_v17  ;;  %362 = vmatprep.mubr.f32.mxu1 %v2067_v17  ;;  %vm1513_vm12 = vcmask 1040384   ;;  %vm1516_vm13 = vcmask 1041408   ;;  %s2068_s3 = smov 32  }
  0x4d   :  { %v1759_v8 = vpack.c.bf16 %v96_v7, %v94_v6  ;;  %v95_v10 = vld [vmem:[#allocation5 + $0x10] sm:$0xff]  ;;  %v98_v12 = vld [vmem:[#allocation5 + $0x28] sm:$0xff]  ;;  %v100_v13 = vld [vmem:[#allocation5 + $0x38] sm:$0xff]  ;;  %vm1519_vm14 = vcmask 1042432   ;;  %vm1522_vm15 = vcmask 1043456   ;;  %s2069_s15 = smov 96  }
  0x4e   :  { %v78_v4 = vsel %vm77_vm0, %v75_v2, 0.0  ;;  %v81_v5 = vsel %vm77_vm0, %v76_v3, 0.0  ;;  %v1761_v11 = vpack.c.bf16 %v95_v10, %v93_v9  ;;  %v97_v14 = vld [vmem:[#allocation5 + $0x20] sm:$0xff]  ;;  %v1763_v15 = vpack.c.bf16 %v100_v13, %v98_v12  ;;  %v99_v16 = vld [vmem:[#allocation5 + $0x30] sm:$0xff]  ;;  %v267_v29 = vld [vmem:[#allocation7 + $0x8] sm:$0xff]  ;;  %s2070_s16 = smov [#allocation10]  }
  0x4f   :  { %79 = vadd.xlane.f32.xlu0 %v78_v4  ;;  %1760 = vmatprep.subr.bf16.mxu0 %v1759_v8  ;;  %v1765_v18 = vpack.c.bf16 %v99_v16, %v97_v14  ;;  %v269_v30 = vld [vmem:[#allocation7 + $0x20] sm:$0xff]  ;;  %v268_v33 = vld [vmem:[#allocation7 + $0x18] sm:$0xff]  ;;  %v273_v36 = vld [vmem:[#allocation7 + $0x50] sm:$0xff]  ;;  %v2959_v13 = vlaneseq  ;;  %s1679_s17 = sshll.u32 %s2070_s16, 4  ;;  %s1680_s17 = int_to_ptr.vmem [resolvable:$true] %s1679_s17 }
  0x50   :  { %1762 = vmatpush1.bf16.msra.mxu0 %v1761_v11  ;;  %v1767_v31 = vpack.c.bf16 %v269_v30, %v267_v29  ;;  %v266_v32 = vld [vmem:[#allocation7] sm:$0xff]  ;;  %v271_v35 = vld [vmem:[#allocation7 + $0x38] sm:$0xff]  ;;  %v270_v38 = vld [vmem:[#allocation7 + $0x30] sm:$0xff]  ;;  %s2027_s18 = scalar_lea.vmem %s1680_s17, 256  ;;  %p2032_p5 = scmp.lt.s32.totalorder %s1680_s17, %s1680_s17 }
  0x51   :  { %1764 = vmatprep.subr.bf16.mxu0 %v1763_v15  ;;  %v1769_v34 = vpack.c.bf16 %v268_v33, %v266_v32  ;;  %v1771_v37 = vpack.c.bf16 %v273_v36, %v271_v35  ;;  %v272_v39 = vld [vmem:[#allocation7 + $0x48] sm:$0xff]  ;;  %v277_v42 = vld [vmem:[#allocation7 + $0x80] sm:$0xff]  ;;  %v276_v45 = vld [vmem:[#allocation7 + $0x78] sm:$0xff]  ;;  %v2158_v14 = vshrl.u32 %v2959_v13, 7  ;;  %p2028_p4 = scmp.ne.s32.totalorder %s1680_s17, %s2027_s18  ;;  %p2033_p6 = scmp.lt.s32.totalorder %s2027_s18, %s2027_s18 }
  0x52   :  { %1768 = vmatprep.subr.bf16.mxu1 %v1767_v31  ;;  %v1773_v40 = vpack.c.bf16 %v272_v39, %v270_v38  ;;  %v275_v41 = vld [vmem:[#allocation7 + $0x68] sm:$0xff]  ;;  %v274_v44 = vld [vmem:[#allocation7 + $0x60] sm:$0xff]  ;;  %v279_v47 = vld [vmem:[#allocation7 + $0x98] sm:$0xff] }
  0x53   :  { %82 = vadd.xlane.f32.xlu0 %v81_v5  ;;  %1770 = vmatpush1.bf16.msra.mxu1 %v1769_v34  ;;  %v1775_v43 = vpack.c.bf16 %v277_v42, %v275_v41  ;;  %v1777_v46 = vpack.c.bf16 %v276_v45, %v274_v44  ;;  %v281_v48 = vld [vmem:[#allocation7 + $0xb0] sm:$0xff]  ;;  %v280_v51 = vld [vmem:[#allocation7 + $0xa8] sm:$0xff]  ;;  %v285_v54 = vld [vmem:[#allocation7 + $0xe0] sm:$0xff]  ;;  %vm196_vm1 = vcmp.lt.s32.totalorder %v2158_v14, 3  ;;  %vm193_vm2 = vcmp.ge.s32.totalorder %v2158_v14, 3  ;;  %p2034_p7 = por %p2033_p6, %p2032_p5 }
  0x54   :  { %1766 = vmatpush1.bf16.msra.mxu0 %v1765_v18  ;;  %1772 = vmatprep.subr.bf16.mxu1 %v1771_v37  ;;  %v1779_v49 = vpack.c.bf16 %v281_v48, %v279_v47  ;;  %v278_v50 = vld [vmem:[#allocation7 + $0x90] sm:$0xff]  ;;  %v283_v53 = vld [vmem:[#allocation7 + $0xc8] sm:$0xff]  ;;  %v282_v56 = vld [vmem:[#allocation7 + $0xc0] sm:$0xff]  ;;  %vm210_vm3 = vcmp.ge.s32.totalorder %v2158_v14, 2  ;;  %vm213_vm4 = vcmp.lt.s32.totalorder %v2158_v14, 2  ;;  %vm230_vm5 = vcmp.lt.s32.totalorder %v2158_v14, 1 }
  0x55   :  { %v1781_v52 = vpack.c.bf16 %v280_v51, %v278_v50  ;;  %v1783_v55 = vpack.c.bf16 %v285_v54, %v283_v53  ;;  %v284_v57 = vld [vmem:[#allocation7 + $0xd8] sm:$0xff]  ;;  %v289_v60 = vld [vmem:[#allocation7 + $0x110] sm:$0xff]  ;;  %v288_v63 = vld [vmem:[#allocation7 + $0x108] sm:$0xff]  ;;  %vm227_vm6 = vcmp.ge.s32.totalorder %v2158_v14, 1  ;;  %p2035_p8 = pnand %p2034_p7, %p2028_p4 }
  0x56   :  { %v1785_v58 = vpack.c.bf16 %v284_v57, %v282_v56  ;;  %v287_v59 = vld [vmem:[#allocation7 + $0xf8] sm:$0xff]  ;;  %v286_v61 = vld [vmem:[#allocation7 + $0xf0] sm:$0xff]  ;;  %v290_v4 = vld [vmem:[#allocation7 + $0x120] sm:$0xff] }
  0x57   :  { %1774 = vmatpush1.bf16.msra.mxu1 %v1773_v40  ;;  %v1787_v62 = vpack.c.bf16 %v289_v60, %v287_v59  ;;  %v1789_v2 = vpack.c.bf16 %v288_v63, %v286_v61  ;;  %v292_v5 = vld [vmem:[#allocation7 + $0x138] sm:$0xff]  ;;  %v297_v7 = vld [vmem:[#allocation7 + $0x170] sm:$0xff]  ;;  %v296_v11 = vld [vmem:[#allocation7 + $0x168] sm:$0xff] }
  0x58   :  { %1776 = vmatprep.subr.bf16.mxu1 %v1775_v43  ;;  %v295_v6 = vld [vmem:[#allocation7 + $0x158] sm:$0xff]  ;;  %v1793_v8 = vpack.c.bf16 %v292_v5, %v290_v4  ;;  %v294_v10 = vld [vmem:[#allocation7 + $0x150] sm:$0xff]  ;;  %v1697_v31 = vld [vmem:[#allocation8 + $0x1] ss:$0 sm:$0xff] }
  0x59   :  { %v1795_v9 = vpack.c.bf16 %v297_v7, %v295_v6  ;;  %v1797_v12 = vpack.c.bf16 %v296_v11, %v294_v10  ;;  %v1695_v36 = vld [vmem:[#allocation8 + $0x4] ss:$0 sm:$0xff]  ;;  %v1698_v42 = vld [vmem:[#allocation8 + $0x2] ss:$0 sm:$0xff]  ;;  %v1699_v48 = vld [vmem:[#allocation8 + $0x3] ss:$0 sm:$0xff] }
  0x5a   :  { %v1702_v5 = vld [vmem:[#allocation8 + $0x5] ss:$0 sm:$0xff]  ;;  %v2194_v6 = vsub.s32 0, %v2158_v14  ;;  %v2201_v10 = vsub.s32 1, %v2158_v14 }
  0x5b   :  { %1778 = vmatpush1.bf16.msra.mxu1 %v1777_v46 }
  0x5c   :  { %1780 = vmatprep.subr.bf16.mxu1 %v1779_v49 }
  0x5f   :  { %1782 = vmatpush1.bf16.msra.mxu1 %v1781_v52 }
  0x60   :  { %1784 = vmatprep.subr.bf16.mxu1 %v1783_v55 }
  0x63   :  { %1786 = vmatpush1.bf16.msra.mxu1 %v1785_v58 }
  0x64   :  { %1788 = vmatprep.subr.bf16.mxu1 %v1787_v62 }
  0x67   :  { %1790 = vmatpush1.bf16.msra.mxu1 %v1789_v2 }
  0xdc   :  { %v80_v19 = vpop.xlane.xlu0 %79 }
  0xdd   :  { %v85_v20 = vmul.f32 0.03125, %v80_v19 }
  0xdf   :  { %v87_v21 = vadd.f32 1e-05, %v85_v20 }
  0xe0   :  { %v83_v22 = vpop.xlane.xlu0 %82 }
  0xe1   :  { %1845 = vrsqrt.f32 %v87_v21  ;;  %v86_v23 = vmul.f32 0.03125, %v83_v22 }
  0xe3   :  { %v88_v24 = vadd.f32 1e-05, %v86_v23 }
  0xe5   :  { %1847 = vrsqrt.f32 %v88_v24 }
  0xeb   :  { %v1846_v25 = vpop.eup %1845 }
  0xec   :  { %v91_v26 = vmul.f32 %v1846_v25, %v73_v0  ;;  %v291_v0 = vld [vmem:[#allocation7 + $0x128] sm:$0xff] }
  0xee   :  { %1693 = vmatmul.mubr.msk.f32.vlgmr.msra.gmra.mrb[0].mxu0 %vm77_vm0, %v91_v26  ;;  %v1696_v26 = vld [vmem:[#allocation8] ss:$0 sm:$0xff] }
  0xef   :  { %v1848_v27 = vpop.eup %1847  ;;  %177 = vmatprep.mubr.f32.mxu0 %v2067_v17 }
  0xf0   :  { %v92_v28 = vmul.f32 %v1848_v27, %v74_v1  ;;  %v293_v1 = vld [vmem:[#allocation7 + $0x140] sm:$0xff] }
  0xf1   :  { %v1791_v3 = vpack.c.bf16 %v293_v1, %v291_v0 }
  0xf2   :  { %1694 = vmatmul.mubr.msk.f32.gmra.mrb[2].mxu0 %vm77_vm0, %v92_v28 }
  0xf3   :  { %1792 = vmatprep.subr.bf16.mxu1 %v1791_v3 }
  0xf4   :  { %1794 = vmatpush1.bf16.msra.mxu1 %v1793_v8 }
  0xf5   :  { %1796 = vmatprep.subr.bf16.mxu1 %v1795_v9 }
  0xf8   :  { %1798 = vmatpush1.bf16.msra.mxu1 %v1797_v12  ;;  %v2209_v12 = vsub.s32 2, %v2158_v14 }
 0x1c1   :  { %v173_v15 = vpop.f32.mrb[0].mxu0 }
 0x1c2   :  { %v2160_v16 = vpop.f32.mrb[1].mxu0  ;;  %v194_v18 = vrot.slane %v173_v15, 5  ;;  %v211_v20 = vrot.slane %v173_v15, 6  ;;  %v228_v25 = vrot.slane %v173_v15, 7  ;;  %v248_v53 = vmul.f32 %v1699_v48, %v173_v15 }
 0x1c3   :  { %v2212_v15 = vsub.s32 3, %v2158_v14 }
 0x1c5   :  { %v179_v19 = vpop.f32.mrb[2].mxu0 }
 0x1c6   :  { %v195_v21 = vrot.slane %v179_v19, 5  ;;  %v212_v22 = vrot.slane %v179_v19, 6  ;;  %v229_v23 = vrot.slane %v179_v19, 7  ;;  %v2166_v24 = vpop.f32.mrb[3].mxu0  ;;  %v249_v54 = vmul.f32 %v1699_v48, %v179_v19 }
 0x1c7   :  { %2964 = vst [vmem:[#allocation15_spill] sm:$0xff] %v2166_v24  ;;  %v2218_v19 = vsub.s32 5, %v2158_v14 }
 0x1c8   :  { %v197_v27 = vsel %vm196_vm1, %v194_v18, %v195_v21  ;;  %v198_v28 = vsel %vm196_vm1, %v195_v21, %v194_v18  ;;  %v214_v29 = vsel %vm213_vm4, %v211_v20, %v212_v22  ;;  %v215_v30 = vsel %vm213_vm4, %v212_v22, %v211_v20 }
 0x1c9   :  { %v199_v32 = vsel %vm193_vm2, %v198_v28, 0.0  ;;  %v200_v33 = vsel %vm193_vm2, %v197_v27, 0.0  ;;  %v216_v34 = vsel %vm210_vm3, %v215_v30, 0.0  ;;  %v217_v35 = vsel %vm210_vm3, %v214_v29, 0.0 }
 0x1ca   :  { %v205_v37 = vmul.f32 %v1696_v26, %v199_v32  ;;  %v206_v38 = vmul.f32 %v1696_v26, %v200_v33  ;;  %v231_v39 = vsel %vm230_vm5, %v228_v25, %v229_v23  ;;  %v232_v40 = vsel %vm230_vm5, %v229_v23, %v228_v25 }
 0x1cb   :  { %v222_v41 = vmul.f32 %v1697_v31, %v216_v34  ;;  %v233_v43 = vsel %vm227_vm6, %v232_v40, 0.0  ;;  %v223_v46 = vmul.f32 %v1697_v31, %v217_v35  ;;  %v234_v47 = vsel %vm227_vm6, %v231_v39, 0.0 }
 0x1cc   :  { %v207_v44 = vadd.f32 %v1695_v36, %v205_v37  ;;  %v208_v45 = vadd.f32 %v1695_v36, %v206_v38  ;;  %v239_v50 = vmul.f32 %v1698_v42, %v233_v43  ;;  %v240_v52 = vmul.f32 %v1698_v42, %v234_v47 }
 0x1cd   :  { %v2215_v18 = vsub.s32 4, %v2158_v14  ;;  %v2221_v20 = vsub.s32 6, %v2158_v14  ;;  %v2230_v25 = vsub.s32 7, %v2158_v14  ;;  %vm1525_vm1 = vcmask 1044480  }
 0x1ce   :  { %v224_v49 = vadd.f32 %v222_v41, %v207_v44  ;;  %v225_v51 = vadd.f32 %v223_v46, %v208_v45  ;;  %vm1528_vm2 = vcmask 1045504   ;;  %vm1531_vm3 = vcmask 1046528  }
 0x1d0   :  { %v241_v55 = vadd.f32 %v239_v50, %v224_v49  ;;  %v242_v56 = vadd.f32 %v240_v52, %v225_v51 }
 0x1d2   :  { %v250_v57 = vadd.f32 %v248_v53, %v241_v55  ;;  %v251_v58 = vadd.f32 %v249_v54, %v242_v56 }
 0x1d4   :  { %v1700_v59 = vmul.f32 -1.442695, %v250_v57  ;;  %v1701_v60 = vmul.f32 -1.442695, %v251_v58 }
 0x1d6   :  { %1849 = vpow2.f32 %v1700_v59 }
 0x1d7   :  { %1851 = vpow2.f32 %v1701_v60 }
 0x1e0   :  { %v1850_v61 = vpop.eup %1849 }
 0x1e1   :  { %v1852_v62 = vpop.eup %1851  ;;  %v258_v63 = vadd.f32 1.0, %v1850_v61 }
 0x1e2   :  { %v259_v0 = vadd.f32 1.0, %v1852_v62 }
 0x1e3   :  { %1853 = vrcp.f32 %v258_v63 }
 0x1e4   :  { %1855 = vrcp.f32 %v259_v0 }
 0x1ed   :  { %v1854_v1 = vpop.eup %1853 }
 0x1ee   :  { %v2186_v2 = vmul.f32 %v1854_v1, %v250_v57  ;;  %v1856_v3 = vpop.eup %1855 }
 0x1ef   :  { %v2190_v4 = vmul.f32 %v1856_v3, %v251_v58 }
 0x1f0   :  { %363 = vmatmul.mubr.f32.vlgmr.msra.gmra.mrb[0].mxu1 %v2186_v2 }
 0x1f1   :  { %368 = vmatprep.mubr.f32.mxu1 %v2067_v17  ;;  %2965 = vst [vmem:[#allocation16_spill] sm:$0xff] %v2190_v4 }
 0x1f4   :  { %369 = vmatmul.mubr.f32.gmra.mrb[2].mxu1 %v2190_v4 }
 0x2c3   :  { %v364_v7 = vpop.f32.mrb[0].mxu1 }
 0x2c4   :  { %v2196_v8 = vadd.f32 %v1702_v5, %v364_v7  ;;  %v2198_v9 = vpop.f32.mrb[1].mxu1 }
 0x2c5   :  { %v2205_v11 = vrot.slane %v2198_v9, %v2194_v6  ;;  %v2227_v23 = vrot.slane %v2198_v9, %v2201_v10  ;;  %v2265_v39 = vrot.slane %v2198_v9, %v2209_v12  ;;  %v2273_v42 = vrot.slane %v2198_v9, %v2212_v15 }
 0x2c6   :  { %v388_v17 = vand.u32 2147483647, %v2196_v8  ;;  %v2281_v49 = vrot.slane %v2198_v9, %v2215_v18  ;;  %v382_v54 = vmax.f32 %v2196_v8, 0.0  ;;  %vm384_vm8 = vcmp.ne.f32.partialorder %v2196_v8, %v2196_v8 }
 0x2c7   :  { %469 = vbcast.lane.b32.xlu0 %v2205_v11, 272  ;;  %450 = vbcast.lane.b32.xlu1 %v2205_v11, 256  ;;  %v370_v21 = vpop.f32.mrb[2].mxu1  ;;  %v2291_v59 = vrot.slane %v2198_v9, %v2218_v19 }
 0x2c8   :  { %v390_v22 = vsub.f32 0.0, %v388_v17  ;;  %v2232_v26 = vadd.f32 %v1702_v5, %v370_v21  ;;  %v372_v27 = vpop.f32.mrb[3].mxu1 }
 0x2c9   :  { %v2235_v28 = vrot.slane %v372_v27, %v2194_v6  ;;  %v2238_v29 = vrot.slane %v372_v27, %v2201_v10  ;;  %v2241_v30 = vrot.slane %v372_v27, %v2209_v12  ;;  %v2244_v31 = vrot.slane %v372_v27, %v2212_v15 }
 0x2ca   :  { %v392_v32 = vmul.f32 1.442695, %v390_v22  ;;  %v389_v33 = vand.u32 2147483647, %v2232_v26  ;;  %v2248_v14 = vrot.slane %v372_v27, %v2215_v18  ;;  %v2251_v34 = vrot.slane %v372_v27, %v2218_v19 }
 0x2cb   :  { %v2254_v35 = vrot.slane %v372_v27, %v2221_v20  ;;  %v2257_v36 = vrot.slane %v372_v27, %v2230_v25  ;;  %590 = vbcast.lane.b32.xlu0 %v2227_v23, 264  ;;  %454 = vbcast.lane.b32.xlu1 %v2205_v11, 264  ;;  %v383_v63 = vmax.f32 %v2232_v26, 0.0  ;;  %vm385_vm9 = vcmp.ne.f32.partialorder %v2232_v26, %v2232_v26 }
 0x2cc   :  { %1857 = vpow2.f32 %v392_v32  ;;  %v391_v37 = vsub.f32 0.0, %v389_v33 }
 0x2ce   :  { %v394_v38 = vmul.f32 1.442695, %v391_v37 }
 0x2cf   :  { %609 = vbcast.lane.b32.xlu0 %v2227_v23, 280  ;;  %473 = vbcast.lane.b32.xlu1 %v2205_v11, 280 }
 0x2d0   :  { %1859 = vpow2.f32 %v394_v38 }
 0x2d3   :  { %726 = vbcast.lane.b32.xlu0 %v2265_v39, 264  ;;  %586 = vbcast.lane.b32.xlu1 %v2227_v23, 256 }
 0x2d6   :  { %v1858_v40 = vpop.eup %1857 }
 0x2d7   :  { %v396_v41 = vadd.f32 1.0, %v1858_v40  ;;  %745 = vbcast.lane.b32.xlu0 %v2265_v39, 280  ;;  %605 = vbcast.lane.b32.xlu1 %v2227_v23, 272  ;;  %v399_v45 = vmul.f32 -0.5, %v1858_v40  ;;  %v402_v48 = vand.u32 2147483647, %v1858_v40 }
 0x2d9   :  { %1861 = vlog2.f32 %v396_v41  ;;  %v400_v46 = vadd.f32 1.0, %v399_v45  ;;  %vm403_vm7 = vcmp.lt.f32.partialorder %v402_v48, 0.0004427343 }
 0x2da   :  { %v1860_v43 = vpop.eup %1859 }
 0x2db   :  { %v405_v44 = vadd.f32 1.0, %v1860_v43  ;;  %862 = vbcast.lane.b32.xlu0 %v2273_v42, 264  ;;  %722 = vbcast.lane.b32.xlu1 %v2265_v39, 256  ;;  %v408_v47 = vmul.f32 -0.5, %v1860_v43  ;;  %v401_v52 = vmul.f32 %v1858_v40, %v400_v46  ;;  %v411_v55 = vand.u32 2147483647, %v1860_v43 }
 0x2dd   :  { %1863 = vlog2.f32 %v405_v44  ;;  %v409_v53 = vadd.f32 1.0, %v408_v47  ;;  %vm412_vm10 = vcmp.lt.f32.partialorder %v411_v55, 0.0004427343 }
 0x2df   :  { %881 = vbcast.lane.b32.xlu0 %v2273_v42, 280  ;;  %741 = vbcast.lane.b32.xlu1 %v2265_v39, 272  ;;  %v410_v61 = vmul.f32 %v1860_v43, %v409_v53 }
 0x2e3   :  { %v1862_v50 = vpop.eup %1861  ;;  %998 = vbcast.lane.b32.xlu0 %v2281_v49, 264  ;;  %858 = vbcast.lane.b32.xlu1 %v2273_v42, 256 }
 0x2e4   :  { %v398_v51 = vmul.f32 0.6931472, %v1862_v50 }
 0x2e6   :  { %v404_v56 = vsel %vm403_vm7, %v401_v52, %v398_v51 }
 0x2e7   :  { %v1864_v57 = vpop.eup %1863  ;;  %v414_v58 = vadd.f32 %v404_v56, %v382_v54  ;;  %1017 = vbcast.lane.b32.xlu0 %v2281_v49, 280  ;;  %877 = vbcast.lane.b32.xlu1 %v2273_v42, 272 }
 0x2e8   :  { %v407_v60 = vmul.f32 0.6931472, %v1864_v57 }
 0x2e9   :  { %v416_v62 = vsel %vm384_vm8, %v2196_v8, %v414_v58  ;;  %v2389_v58 = vld [vmem:[#allocation8 + $0x10] sm:$0xff] }
 0x2ea   :  { %v420_v0 = vmul.f32 %v416_v62, %v2186_v2  ;;  %v413_v1 = vsel %vm412_vm10, %v410_v61, %v407_v60  ;;  %v2300_v3 = vrot.slane %v416_v62, %v2194_v6  ;;  %v2303_v5 = vrot.slane %v416_v62, %v2201_v10 }
 0x2eb   :  { %v415_v7 = vadd.f32 %v413_v1, %v383_v63  ;;  %1134 = vbcast.lane.b32.xlu0 %v2291_v59, 264  ;;  %v2307_v8 = vrot.slane %v416_v62, %v2209_v12  ;;  %v2310_v17 = vrot.slane %v416_v62, %v2212_v15  ;;  %v2313_v21 = vrot.slane %v416_v62, %v2215_v18  ;;  %v2396_v63 = vld [vmem:[#allocation8 + $0x8] sm:$0xff] }
 0x2ec   :  { %994 = vbcast.lane.b32.xlu1 %v2281_v49, 256  ;;  %v2317_v22 = vrot.slane %v420_v0, %v2194_v6  ;;  %v2320_v27 = vrot.slane %v420_v0, %v2201_v10  ;;  %v2323_v32 = vrot.slane %v420_v0, %v2209_v12  ;;  %v2326_v33 = vrot.slane %v420_v0, %v2212_v15 }
 0x2ed   :  { %v417_v37 = vsel %vm385_vm9, %v2232_v26, %v415_v7  ;;  %v2333_v38 = vrot.slane %v420_v0, %v2215_v18  ;;  %v2336_v40 = vrot.slane %v420_v0, %v2218_v19  ;;  %v2339_v41 = vrot.slane %v420_v0, %v2221_v20 }
 0x2ee   :  { %v421_v43 = vmul.f32 %v417_v37, %v2190_v4  ;;  %v2345_v44 = vrot.slane %v420_v0, %v2230_v25  ;;  %v2349_v26 = vrot.slane %v2198_v9, %v2221_v20  ;;  %v2353_v45 = vrot.slane %v416_v62, %v2218_v19 }
 0x2ef   :  { %1153 = vbcast.lane.b32.xlu0 %v2291_v59, 280  ;;  %v2357_v46 = vrot.slane %v416_v62, %v2221_v20  ;;  %v2360_v47 = vrot.slane %v416_v62, %v2230_v25  ;;  %v432_v56 = vrot.slane %v417_v37, %v2194_v6  ;;  %v568_v57 = vrot.slane %v417_v37, %v2201_v10 }
 0x2f0   :  { %1013 = vbcast.lane.b32.xlu1 %v2281_v49, 272  ;;  %v2363_v48 = vrot.slane %v421_v43, %v2201_v10  ;;  %v2368_v50 = vrot.slane %v421_v43, %v2209_v12  ;;  %v2371_v51 = vrot.slane %v421_v43, %v2194_v6  ;;  %v2374_v52 = vrot.slane %v421_v43, %v2212_v15 }
 0x2f1   :  { %v2377_v53 = vrot.slane %v421_v43, %v2215_v18  ;;  %v2380_v54 = vrot.slane %v421_v43, %v2218_v19  ;;  %v2384_v55 = vrot.slane %v421_v43, %v2221_v20  ;;  %v704_v60 = vrot.slane %v417_v37, %v2209_v12 }
 0x2f2   :  { %v840_v61 = vrot.slane %v417_v37, %v2212_v15  ;;  %v2394_v62 = vrot.slane %v421_v43, %v2230_v25  ;;  %v2399_v0 = vmul.f32 %v432_v56, %v2389_v58  ;;  %v2402_v6 = vmul.f32 %v568_v57, %v2389_v58 }
 0x2f3   :  { %1270 = vbcast.lane.b32.xlu0 %v2349_v26, 264  ;;  %2966 = vst [vmem:[#allocation17_spill] sm:$0xff] %v2384_v55  ;;  %v2405_v10 = vmul.f32 %v704_v60, %v2389_v58  ;;  %v2411_v12 = vmul.f32 %v432_v56, %v2396_v63  ;;  %v2416_v15 = vmul.f32 %v568_v57, %v2396_v63 }
 0x2f4   :  { %1130 = vbcast.lane.b32.xlu1 %v2291_v59, 256  ;;  %2967 = vst [vmem:[#allocation18_spill] sm:$0xff] %v2394_v62  ;;  %v2408_v1 = vmul.f32 %v840_v61, %v2389_v58  ;;  %v976_v7 = vrot.slane %v417_v37, %v2215_v18  ;;  %v2420_v43 = vmul.f32 %v704_v60, %v2396_v63 }
 0x2f5   :  { %v1112_v13 = vrot.slane %v417_v37, %v2218_v19  ;;  %v2424_v4 = vmul.f32 %v840_v61, %v2396_v63  ;;  %v1248_v24 = vrot.slane %v417_v37, %v2221_v20  ;;  %v1384_v18 = vrot.slane %v417_v37, %v2230_v25 }
 0x2f6   :  { %v2428_v56 = vmul.f32 %v976_v7, %v2389_v58  ;;  %v2440_v19 = vmul.f32 %v976_v7, %v2396_v63 }
 0x2f7   :  { %1289 = vbcast.lane.b32.xlu0 %v2349_v26, 280  ;;  %v2433_v57 = vmul.f32 %v1112_v13, %v2389_v58  ;;  %v2437_v60 = vmul.f32 %v1248_v24, %v2389_v58  ;;  %v2443_v61 = vmul.f32 %v1384_v18, %v2389_v58  ;;  %v2446_v62 = vmul.f32 %v1112_v13, %v2396_v63 }
 0x2f8   :  { %1149 = vbcast.lane.b32.xlu1 %v2291_v59, 272  ;;  %v2450_v20 = vmul.f32 %v1248_v24, %v2396_v63  ;;  %v2454_v37 = vmul.f32 %v1384_v18, %v2396_v63  ;;  %v2466_v13 = vrot.slane %v2198_v9, %v2230_v25  ;;  %v433_v24 = vmul.f32 %v2300_v3, %v2396_v63 }
 0x2f9   :  { %2968 = vst [vmem:[#allocation19_spill] sm:$0xff] %v2446_v62  ;;  %v570_v18 = vmul.f32 %v2303_v5, %v2389_v58 }
 0x2fa   :  { %2969 = vst [vmem:[#allocation20_spill] sm:$0xff] %v2450_v20  ;;  %2970 = vst [vmem:[#allocation21_spill] sm:$0xff] %v2454_v37  ;;  %v437_v9 = vmul.f32 1.442695, %v433_v24  ;;  %v705_v37 = vmul.f32 %v2307_v8, %v2396_v63 }
 0x2fb   :  { %493 = vbcast.lane.b32.xlu0 %v2205_v11, 296 }
 0x2fc   :  { %1266 = vbcast.lane.b32.xlu1 %v2349_v26, 256  ;;  %1865 = vpow2.f32 %v437_v9  ;;  %v575_v9 = vmul.f32 1.442695, %v570_v18  ;;  %v709_v62 = vmul.f32 1.442695, %v705_v37  ;;  %v841_v37 = vmul.f32 %v2310_v17, %v2396_v63 }
 0x2ff   :  { %509 = vbcast.lane.b32.xlu0 %v2205_v11, 312 }
 0x300   :  { %1285 = vbcast.lane.b32.xlu1 %v2349_v26, 272 }
 0x303   :  { %629 = vbcast.lane.b32.xlu0 %v2227_v23, 296 }
 0x304   :  { %489 = vbcast.lane.b32.xlu1 %v2205_v11, 288 }
 0x307   :  { %645 = vbcast.lane.b32.xlu0 %v2227_v23, 312 }
 0x308   :  { %505 = vbcast.lane.b32.xlu1 %v2205_v11, 304  ;;  %v569_v11 = vmul.f32 %v2303_v5, %v2396_v63 }
 0x30a   :  { %v573_v25 = vmul.f32 1.442695, %v569_v11  ;;  %v706_v11 = vmul.f32 %v2307_v8, %v2389_v58 }
 0x30b   :  { %765 = vbcast.lane.b32.xlu0 %v2265_v39, 296 }
 0x30c   :  { %625 = vbcast.lane.b32.xlu1 %v2227_v23, 288  ;;  %1867 = vpow2.f32 %v573_v25  ;;  %v711_v18 = vmul.f32 1.442695, %v706_v11 }
 0x30f   :  { %781 = vbcast.lane.b32.xlu0 %v2265_v39, 312 }
 0x310   :  { %641 = vbcast.lane.b32.xlu1 %v2227_v23, 304  ;;  %v434_v23 = vmul.f32 %v2300_v3, %v2389_v58  ;;  %v1866_v3 = vpop.eup %1865 }
 0x311   :  { %v523_v5 = vmul.f32 0.0, %v1866_v3 }
 0x312   :  { %v439_v7 = vmul.f32 1.442695, %v434_v23 }
 0x313   :  { %901 = vbcast.lane.b32.xlu0 %v2273_v42, 296 }
 0x314   :  { %761 = vbcast.lane.b32.xlu1 %v2265_v39, 288  ;;  %1869 = vpow2.f32 %v439_v7 }
 0x315   :  { %1871 = vpow2.f32 %v575_v9 }
 0x316   :  { %v1868_v20 = vpop.eup %1867  ;;  %1873 = vpow2.f32 %v711_v18 }
 0x317   :  { %917 = vbcast.lane.b32.xlu0 %v2273_v42, 312 }
 0x318   :  { %777 = vbcast.lane.b32.xlu1 %v2265_v39, 304  ;;  %v2971_v39 = vlaneseq }
 0x31b   :  { %1406 = vbcast.lane.b32.xlu0 %v2466_v13, 264 }
 0x31c   :  { %897 = vbcast.lane.b32.xlu1 %v2273_v42, 288 }
 0x31f   :  { %1425 = vbcast.lane.b32.xlu0 %v2466_v13, 280 }
 0x320   :  { %913 = vbcast.lane.b32.xlu1 %v2273_v42, 304  ;;  %v2487_v42 = vand.u32 127, %v2971_v39  ;;  %v842_v39 = vmul.f32 %v2310_v17, %v2389_v58 }
 0x322   :  { %vm424_vm11 = vcmp.lt.s32.totalorder %v2487_v42, 64  ;;  %v847_v3 = vmul.f32 1.442695, %v842_v39 }
 0x323   :  { %1037 = vbcast.lane.b32.xlu0 %v2281_v49, 296 }
 0x324   :  { %1402 = vbcast.lane.b32.xlu1 %v2466_v13, 256  ;;  %1875 = vpow2.f32 %v847_v3 }
 0x325   :  { %1877 = vpow2.f32 %v709_v62 }
 0x327   :  { %1053 = vbcast.lane.b32.xlu0 %v2281_v49, 312 }
 0x328   :  { %1421 = vbcast.lane.b32.xlu1 %v2466_v13, 272 }
 0x32b   :  { %1173 = vbcast.lane.b32.xlu0 %v2291_v59, 296 }
 0x32c   :  { %1033 = vbcast.lane.b32.xlu1 %v2281_v49, 288 }
 0x32f   :  { %1189 = vbcast.lane.b32.xlu0 %v2291_v59, 312 }
 0x330   :  { %1049 = vbcast.lane.b32.xlu1 %v2281_v49, 304 }
 0x333   :  { %1309 = vbcast.lane.b32.xlu0 %v2349_v26, 296 }
 0x334   :  { %1169 = vbcast.lane.b32.xlu1 %v2291_v59, 288 }
 0x337   :  { %1325 = vbcast.lane.b32.xlu0 %v2349_v26, 312 }
 0x338   :  { %1185 = vbcast.lane.b32.xlu1 %v2291_v59, 304 }
 0x339   :  { %v470_v49 = vpop.permute.xlu0 %469  ;;  %v451_v24 = vpop.permute.xlu1 %450 }
 0x33a   :  { %v483_v23 = vsel %vm424_vm11, %v451_v24, %v470_v49 }
 0x33b   :  { %v535_v25 = vmul.f32 %v2317_v22, %v483_v23  ;;  %1445 = vbcast.lane.b32.xlu0 %v2466_v13, 296  ;;  %v1870_v23 = vpop.eup %1869 }
 0x33c   :  { %1305 = vbcast.lane.b32.xlu1 %v2349_v26, 288 }
 0x33d   :  { %v591_v59 = vpop.permute.xlu0 %590  ;;  %v2505_v7 = vadd.f32 %v535_v25, %v523_v5  ;;  %v455_v49 = vpop.permute.xlu1 %454  ;;  %v524_v25 = vmul.f32 0.0, %v1870_v23 }
 0x33f   :  { %1461 = vbcast.lane.b32.xlu0 %v2466_v13, 312  ;;  %v659_v24 = vmul.f32 %v1868_v20, %v2505_v7 }
 0x340   :  { %1321 = vbcast.lane.b32.xlu1 %v2349_v26, 304  ;;  %v978_v26 = vmul.f32 %v2313_v21, %v2389_v58 }
 0x341   :  { %v610_v55 = vpop.permute.xlu0 %609  ;;  %v474_v9 = vpop.permute.xlu1 %473 }
 0x342   :  { %v484_v11 = vsel %vm424_vm11, %v455_v49, %v474_v9  ;;  %v620_v20 = vsel %vm424_vm11, %v591_v59, %v610_v55  ;;  %v1872_v49 = vpop.eup %1871  ;;  %v983_v23 = vmul.f32 1.442695, %v978_v26  ;;  %v845_v55 = vmul.f32 1.442695, %v841_v37 }
 0x343   :  { %601 = vbcast.lane.b32.xlu0 %v2238_v29, 264  ;;  %v536_v8 = vmul.f32 %v2317_v22, %v484_v11  ;;  %v672_v22 = vmul.f32 %v2320_v27, %v620_v20  ;;  %v1874_v11 = vpop.eup %1873  ;;  %v1114_v20 = vmul.f32 %v2353_v45, %v2389_v58  ;;  %v977_v37 = vmul.f32 %v2313_v21, %v2396_v63 }
 0x344   :  { %1441 = vbcast.lane.b32.xlu1 %v2466_v13, 288  ;;  %1879 = vpow2.f32 %v983_v23 }
 0x345   :  { %v727_v5 = vpop.permute.xlu0 %726  ;;  %v587_v39 = vpop.permute.xlu1 %586  ;;  %v2523_v18 = vadd.f32 %v536_v8, %v524_v25  ;;  %1881 = vpow2.f32 %v845_v55 }
 0x347   :  { %617 = vbcast.lane.b32.xlu0 %v2238_v29, 280  ;;  %v660_v3 = vmul.f32 %v1872_v49, %v2523_v18  ;;  %v1876_v49 = vpop.eup %1875 }
 0x348   :  { %1457 = vbcast.lane.b32.xlu1 %v2466_v13, 304 }
 0x349   :  { %v746_v9 = vpop.permute.xlu0 %745  ;;  %v606_v59 = vpop.permute.xlu1 %605  ;;  %v2531_v17 = vadd.f32 %v672_v22, %v660_v3 }
 0x34a   :  { %v756_v62 = vsel %vm424_vm11, %v727_v5, %v746_v9  ;;  %v619_v25 = vsel %vm424_vm11, %v587_v39, %v606_v59  ;;  %v981_v59 = vmul.f32 1.442695, %v977_v37 }
 0x34b   :  { %v808_v8 = vmul.f32 %v2323_v32, %v756_v62  ;;  %737 = vbcast.lane.b32.xlu0 %v2241_v30, 264  ;;  %v671_v13 = vmul.f32 %v2320_v27, %v619_v25  ;;  %v796_v26 = vmul.f32 %v1874_v11, %v2531_v17  ;;  %v1878_v27 = vpop.eup %1877  ;;  %v1119_v62 = vmul.f32 1.442695, %v1114_v20 }
 0x34c   :  { %461 = vbcast.lane.b32.xlu1 %v2235_v28, 256 }
 0x34d   :  { %v863_v5 = vpop.permute.xlu0 %862  ;;  %v723_v22 = vpop.permute.xlu1 %722  ;;  %v2544_v39 = vadd.f32 %v808_v8, %v796_v26  ;;  %v2546_v3 = vadd.f32 %v671_v13, %v659_v24  ;;  %1883 = vpow2.f32 %v1119_v62  ;;  %v1250_v13 = vmul.f32 %v2357_v46, %v2389_v58 }
 0x34e   :  { %1885 = vpow2.f32 %v981_v59  ;;  %v1880_v37 = vpop.eup %1879 }
 0x34f   :  { %753 = vbcast.lane.b32.xlu0 %v2241_v30, 280  ;;  %v932_v23 = vmul.f32 %v1876_v49, %v2544_v39  ;;  %v795_v9 = vmul.f32 %v1878_v27, %v2546_v3  ;;  %v1882_v27 = vpop.eup %1881 }
 0x350   :  { %465 = vbcast.lane.b32.xlu1 %v2235_v28, 264 }
 0x351   :  { %v882_v55 = vpop.permute.xlu0 %881  ;;  %v742_v11 = vpop.permute.xlu1 %741 }
 0x352   :  { %v892_v21 = vsel %vm424_vm11, %v863_v5, %v882_v55  ;;  %v755_v24 = vsel %vm424_vm11, %v723_v22, %v742_v11  ;;  %v1113_v5 = vmul.f32 %v2353_v45, %v2396_v63  ;;  %v1255_v55 = vmul.f32 1.442695, %v1250_v13 }
 0x353   :  { %v944_v8 = vmul.f32 %v2326_v33, %v892_v21  ;;  %873 = vbcast.lane.b32.xlu0 %v2244_v31, 264  ;;  %v807_v25 = vmul.f32 %v2323_v32, %v755_v24  ;;  %v1386_v24 = vmul.f32 %v2360_v47, %v2389_v58 }
 0x354   :  { %477 = vbcast.lane.b32.xlu1 %v2235_v28, 272  ;;  %v1117_v21 = vmul.f32 1.442695, %v1113_v5  ;;  %1887 = vpow2.f32 %v1255_v55 }
 0x355   :  { %v999_v26 = vpop.permute.xlu0 %998  ;;  %v2562_v20 = vadd.f32 %v944_v8, %v932_v23  ;;  %v859_v49 = vpop.permute.xlu1 %858  ;;  %v2566_v22 = vadd.f32 %v807_v25, %v795_v9  ;;  %v1391_v55 = vmul.f32 1.442695, %v1386_v24 }
 0x356   :  { %1889 = vpow2.f32 %v1117_v21 }
 0x357   :  { %889 = vbcast.lane.b32.xlu0 %v2244_v31, 280  ;;  %v1068_v32 = vmul.f32 %v1880_v37, %v2562_v20  ;;  %v931_v62 = vmul.f32 %v1882_v27, %v2566_v22  ;;  %v1884_v5 = vpop.eup %1883  ;;  %1891 = vpow2.f32 %v1391_v55 }
 0x358   :  { %481 = vbcast.lane.b32.xlu1 %v2235_v28, 280  ;;  %v1886_v27 = vpop.eup %1885 }
 0x359   :  { %v1018_v23 = vpop.permute.xlu0 %1017  ;;  %v878_v45 = vpop.permute.xlu1 %877 }
 0x35a   :  { %v1028_v59 = vsel %vm424_vm11, %v999_v26, %v1018_v23  ;;  %v891_v9 = vsel %vm424_vm11, %v859_v49, %v878_v45  ;;  %v1249_v26 = vmul.f32 %v2357_v46, %v2396_v63 }
 0x35b   :  { %v1080_v11 = vmul.f32 %v2333_v38, %v1028_v59  ;;  %1009 = vbcast.lane.b32.xlu0 %v2248_v14, 264  ;;  %v943_v8 = vmul.f32 %v2326_v33, %v891_v9 }
 0x35c   :  { %597 = vbcast.lane.b32.xlu1 %v2238_v29, 256  ;;  %v1253_v23 = vmul.f32 1.442695, %v1249_v26 }
 0x35d   :  { %v1135_v25 = vpop.permute.xlu0 %1134  ;;  %v2582_v13 = vadd.f32 %v1080_v11, %v1068_v32  ;;  %v2586_v49 = vadd.f32 %v943_v8, %v931_v62  ;;  %v1385_v8 = vmul.f32 %v2360_v47, %v2396_v63 }
 0x35e   :  { %v995_v37 = vpop.permute.xlu1 %994  ;;  %1893 = vpow2.f32 %v1253_v23  ;;  %v1888_v24 = vpop.eup %1887 }
 0x35f   :  { %1025 = vbcast.lane.b32.xlu0 %v2248_v14, 280  ;;  %v1204_v33 = vmul.f32 %v1884_v5, %v2582_v13  ;;  %v1067_v58 = vmul.f32 %v1886_v27, %v2586_v49 }
 0x360   :  { %613 = vbcast.lane.b32.xlu1 %v2238_v29, 272  ;;  %v1890_v5 = vpop.eup %1889 }
 0x361   :  { %v1154_v32 = vpop.permute.xlu0 %1153 }
 0x362   :  { %v1164_v21 = vsel %vm424_vm11, %v1135_v25, %v1154_v32  ;;  %v1014_v46 = vpop.permute.xlu1 %1013 }
 0x363   :  { %v1216_v59 = vmul.f32 %v2336_v40, %v1164_v21  ;;  %v1027_v62 = vsel %vm424_vm11, %v995_v37, %v1014_v46  ;;  %1145 = vbcast.lane.b32.xlu0 %v2251_v34, 264  ;;  %v1892_v46 = vpop.eup %1891 }
 0x364   :  { %v1079_v45 = vmul.f32 %v2333_v38, %v1027_v62  ;;  %733 = vbcast.lane.b32.xlu1 %v2241_v30, 256 }
 0x365   :  { %v1271_v11 = vpop.permute.xlu0 %1270  ;;  %v2600_v9 = vadd.f32 %v1216_v59, %v1204_v33  ;;  %v1389_v33 = vmul.f32 1.442695, %v1385_v8 }
 0x366   :  { %v1131_v25 = vpop.permute.xlu1 %1130  ;;  %v2604_v26 = vadd.f32 %v1079_v45, %v1067_v58 }
 0x367   :  { %1161 = vbcast.lane.b32.xlu0 %v2251_v34, 280  ;;  %v1340_v37 = vmul.f32 %v1888_v24, %v2600_v9  ;;  %1895 = vpow2.f32 %v1389_v33 }
 0x368   :  { %749 = vbcast.lane.b32.xlu1 %v2241_v30, 272  ;;  %v1203_v38 = vmul.f32 %v1890_v5, %v2604_v26  ;;  %v1894_v45 = vpop.eup %1893 }
 0x369   :  { %v1290_v27 = vpop.permute.xlu0 %1289 }
 0x36a   :  { %v1300_v55 = vsel %vm424_vm11, %v1271_v11, %v1290_v27  ;;  %v1150_v32 = vpop.permute.xlu1 %1149 }
 0x36b   :  { %v1352_v47 = vmul.f32 %v2339_v41, %v1300_v55  ;;  %v1163_v63 = vsel %vm424_vm11, %v1131_v25, %v1150_v32  ;;  %1281 = vbcast.lane.b32.xlu0 %v2254_v35, 264 }
 0x36c   :  { %v1215_v58 = vmul.f32 %v2336_v40, %v1163_v63  ;;  %869 = vbcast.lane.b32.xlu1 %v2244_v31, 256 }
 0x36d   :  { %v494_v23 = vpop.permute.xlu0 %493  ;;  %v2618_v21 = vadd.f32 %v1352_v47, %v1340_v37 }
 0x36e   :  { %v1267_v59 = vpop.permute.xlu1 %1266  ;;  %v2620_v62 = vadd.f32 %v1215_v58, %v1203_v38 }
 0x36f   :  { %1297 = vbcast.lane.b32.xlu0 %v2254_v35, 280  ;;  %v2624_v11 = vmul.f32 %v1892_v46, %v2618_v21 }
 0x370   :  { %885 = vbcast.lane.b32.xlu1 %v2244_v31, 272  ;;  %v1339_v40 = vmul.f32 %v1894_v45, %v2620_v62 }
 0x371   :  { %v510_v8 = vpop.permute.xlu0 %509  ;;  %v1896_v33 = vpop.eup %1895 }
 0x372   :  { %v1286_v24 = vpop.permute.xlu1 %1285  ;;  %v520_v32 = vsel %vm424_vm11, %v494_v23, %v510_v8 }
 0x373   :  { %v1299_v25 = vsel %vm424_vm11, %v1267_v59, %v1286_v24  ;;  %501 = vbcast.lane.b32.xlu0 %v2235_v28, 296  ;;  %v544_v58 = vmul.f32 %v2523_v18, %v520_v32 }
 0x374   :  { %v1351_v5 = vmul.f32 %v2339_v41, %v1299_v25  ;;  %1005 = vbcast.lane.b32.xlu1 %v2248_v14, 256 }
 0x375   :  { %v630_v37 = vpop.permute.xlu0 %629 }
 0x376   :  { %v490_v38 = vpop.permute.xlu1 %489  ;;  %v2633_v27 = vadd.f32 %v1351_v5, %v1339_v40 }
 0x377   :  { %517 = vbcast.lane.b32.xlu0 %v2235_v28, 312 }
 0x378   :  { %1021 = vbcast.lane.b32.xlu1 %v2248_v14, 272  ;;  %v2638_v55 = vmul.f32 %v1896_v33, %v2633_v27 }
 0x379   :  { %v646_v47 = vpop.permute.xlu0 %645 }
 0x37a   :  { %v506_v63 = vpop.permute.xlu1 %505  ;;  %v656_v23 = vsel %vm424_vm11, %v630_v37, %v646_v47 }
 0x37b   :  { %v519_v41 = vsel %vm424_vm11, %v490_v38, %v506_v63  ;;  %637 = vbcast.lane.b32.xlu0 %v2238_v29, 296 }
 0x37c   :  { %v543_v46 = vmul.f32 %v2505_v7, %v519_v41  ;;  %1141 = vbcast.lane.b32.xlu1 %v2251_v34, 256  ;;  %v680_v7 = vmul.f32 %v2531_v17, %v656_v23 }
 0x37d   :  { %v766_v59 = vpop.permute.xlu0 %765 }
 0x37e   :  { %v547_v45 = vadd.f32 %v544_v58, %v543_v46  ;;  %v626_v40 = vpop.permute.xlu1 %625 }
 0x37f   :  { %653 = vbcast.lane.b32.xlu0 %v2238_v29, 312 }
 0x380   :  { %v548_v24 = vrot.slane %v547_v45, 4  ;;  %1157 = vbcast.lane.b32.xlu1 %v2251_v34, 272 }
 0x381   :  { %v782_v8 = vpop.permute.xlu0 %781 }
 0x382   :  { %v549_v25 = vadd.f32 %v548_v24, %v547_v45  ;;  %v642_v5 = vpop.permute.xlu1 %641  ;;  %v792_v47 = vsel %vm424_vm11, %v766_v59, %v782_v8 }
 0x383   :  { %v655_v18 = vsel %vm424_vm11, %v626_v40, %v642_v5  ;;  %773 = vbcast.lane.b32.xlu0 %v2241_v30, 296  ;;  %v816_v40 = vmul.f32 %v2544_v39, %v792_v47 }
 0x384   :  { %v679_v38 = vmul.f32 %v2546_v3, %v655_v18  ;;  %1277 = vbcast.lane.b32.xlu1 %v2254_v35, 256  ;;  %v550_v32 = vrot.slane %v549_v25, 2 }
 0x385   :  { %v902_v33 = vpop.permute.xlu0 %901 }
 0x386   :  { %v683_v63 = vadd.f32 %v680_v7, %v679_v38  ;;  %v762_v41 = vpop.permute.xlu1 %761  ;;  %v551_v46 = vadd.f32 %v550_v32, %v549_v25 }
 0x387   :  { %789 = vbcast.lane.b32.xlu0 %v2241_v30, 312 }
 0x388   :  { %v684_v37 = vrot.slane %v683_v63, 4  ;;  %1293 = vbcast.lane.b32.xlu1 %v2254_v35, 272  ;;  %v552_v18 = vrot.slane %v551_v46, 1 }
 0x389   :  { %v918_v58 = vpop.permute.xlu0 %917 }
 0x38a   :  { %v685_v45 = vadd.f32 %v684_v37, %v683_v63  ;;  %v778_v17 = vpop.permute.xlu1 %777  ;;  %v928_v39 = vsel %vm424_vm11, %v902_v33, %v918_v58  ;;  %v553_v63 = vadd.f32 %v552_v18, %v551_v46 }
 0x38b   :  { %v791_v3 = vsel %vm424_vm11, %v762_v41, %v778_v17  ;;  %909 = vbcast.lane.b32.xlu0 %v2244_v31, 296 }
 0x38c   :  { %v686_v24 = vrot.slane %v685_v45, 2  ;;  %v815_v23 = vmul.f32 %v2566_v22, %v791_v3  ;;  %497 = vbcast.lane.b32.xlu1 %v2235_v28, 288  ;;  %v952_v3 = vmul.f32 %v2562_v20, %v928_v39 }
 0x38d   :  { %v1407_v5 = vpop.permute.xlu0 %1406 }
 0x38e   :  { %v687_v7 = vadd.f32 %v686_v24, %v685_v45  ;;  %v819_v59 = vadd.f32 %v816_v40, %v815_v23  ;;  %v898_v8 = vpop.permute.xlu1 %897 }
 0x38f   :  { %925 = vbcast.lane.b32.xlu0 %v2244_v31, 312 }
 0x390   :  { %v688_v25 = vrot.slane %v687_v7, 1  ;;  %v820_v38 = vrot.slane %v819_v59, 4  ;;  %513 = vbcast.lane.b32.xlu1 %v2235_v28, 304 }
 0x391   :  { %v1426_v32 = vpop.permute.xlu0 %1425 }
 0x392   :  { %v689_v22 = vadd.f32 %v688_v25, %v687_v7  ;;  %v821_v41 = vadd.f32 %v820_v38, %v819_v59  ;;  %v1436_v37 = vsel %vm424_vm11, %v1407_v5, %v1426_v32  ;;  %v914_v47 = vpop.permute.xlu1 %913 }
 0x393   :  { %v1488_v45 = vmul.f32 %v2345_v44, %v1436_v37  ;;  %v927_v17 = vsel %vm424_vm11, %v898_v8, %v914_v47  ;;  %1417 = vbcast.lane.b32.xlu0 %v2257_v36, 264 }
 0x394   :  { %v1514_v28 = vsel %vm1513_vm12, %v553_v63, %v689_v22  ;;  %v822_v33 = vrot.slane %v821_v41, 2  ;;  %v951_v58 = vmul.f32 %v2586_v49, %v927_v17  ;;  %633 = vbcast.lane.b32.xlu1 %v2238_v29, 288 }
 0x395   :  { %v1038_v46 = vpop.permute.xlu0 %1037  ;;  %v2683_v40 = vadd.f32 %v1488_v45, %v2624_v11 }
 0x396   :  { %v823_v24 = vadd.f32 %v822_v33, %v821_v41  ;;  %v955_v23 = vadd.f32 %v952_v3, %v951_v58  ;;  %v1403_v5 = vpop.permute.xlu1 %1402 }
 0x397   :  { %1433 = vbcast.lane.b32.xlu0 %v2257_v36, 280 }
 0x398   :  { %v824_v18 = vrot.slane %v823_v24, 1  ;;  %v956_v7 = vrot.slane %v955_v23, 4  ;;  %649 = vbcast.lane.b32.xlu1 %v2238_v29, 304 }
 0x399   :  { %v1054_v20 = vpop.permute.xlu0 %1053 }
 0x39a   :  { %v825_v59 = vadd.f32 %v824_v18, %v823_v24  ;;  %v957_v8 = vadd.f32 %v956_v7, %v955_v23  ;;  %v1422_v49 = vpop.permute.xlu1 %1421  ;;  %v1064_v37 = vsel %vm424_vm11, %v1038_v46, %v1054_v20  ;;  %v1704_v46 = vmul.f32 -1.442695, %v2160_v16 }
 0x39b   :  { %v1435_v25 = vsel %vm424_vm11, %v1403_v5, %v1422_v49  ;;  %1045 = vbcast.lane.b32.xlu0 %v2248_v14, 296 }
 0x39c   :  { %v1517_v11 = vsel %vm1516_vm13, %v1514_v28, %v825_v59  ;;  %v958_v38 = vrot.slane %v957_v8, 2  ;;  %v1487_v39 = vmul.f32 %v2345_v44, %v1435_v25  ;;  %769 = vbcast.lane.b32.xlu1 %v2241_v30, 288  ;;  %v1088_v28 = vmul.f32 %v2582_v13, %v1064_v37 }
 0x39d   :  { %v1174_v32 = vpop.permute.xlu0 %1173  ;;  %1897 = vpow2.f32 %v1704_v46 }
 0x39e   :  { %v959_v63 = vadd.f32 %v958_v38, %v957_v8  ;;  %v1034_v29 = vpop.permute.xlu1 %1033  ;;  %v2694_v22 = vadd.f32 %v1487_v39, %v2638_v55 }
 0x39f   :  { %1061 = vbcast.lane.b32.xlu0 %v2248_v14, 312 }
 0x3a0   :  { %v960_v41 = vrot.slane %v959_v63, 1  ;;  %785 = vbcast.lane.b32.xlu1 %v2241_v30, 304 }
 0x3a1   :  { %v1190_v47 = vpop.permute.xlu0 %1189 }
 0x3a2   :  { %v961_v45 = vadd.f32 %v960_v41, %v959_v63  ;;  %v1050_v44 = vpop.permute.xlu1 %1049  ;;  %v1200_v23 = vsel %vm424_vm11, %v1174_v32, %v1190_v47 }
 0x3a3   :  { %v1063_v17 = vsel %vm424_vm11, %v1034_v29, %v1050_v44  ;;  %1181 = vbcast.lane.b32.xlu0 %v2251_v34, 296  ;;  %v1224_v7 = vmul.f32 %v2600_v9, %v1200_v23 }
 0x3a4   :  { %v1520_v55 = vsel %vm1519_vm14, %v1517_v11, %v961_v45  ;;  %v1087_v3 = vmul.f32 %v2604_v26, %v1063_v17  ;;  %905 = vbcast.lane.b32.xlu1 %v2244_v31, 288 }
 0x3a5   :  { %v1310_v30 = vpop.permute.xlu0 %1309 }
 0x3a6   :  { %v1091_v33 = vadd.f32 %v1088_v28, %v1087_v3  ;;  %v1170_v58 = vpop.permute.xlu1 %1169 }
 0x3a7   :  { %1197 = vbcast.lane.b32.xlu0 %v2251_v34, 312  ;;  %v1898_v17 = vpop.eup %1897 }
 0x3a8   :  { %v1092_v24 = vrot.slane %v1091_v33, 4  ;;  %921 = vbcast.lane.b32.xlu1 %v2244_v31, 304 }
 0x3a9   :  { %v1326_v5 = vpop.permute.xlu0 %1325 }
 0x3aa   :  { %v1093_v18 = vadd.f32 %v1092_v24, %v1091_v33  ;;  %v1186_v13 = vpop.permute.xlu1 %1185  ;;  %v1336_v39 = vsel %vm424_vm11, %v1310_v30, %v1326_v5  ;;  %v441_v33 = vmul.f32 1.442695, %v2411_v12 }
 0x3ab   :  { %v1199_v26 = vsel %vm424_vm11, %v1170_v58, %v1186_v13  ;;  %1317 = vbcast.lane.b32.xlu0 %v2254_v35, 296  ;;  %v1360_v41 = vmul.f32 %v2618_v21, %v1336_v39  ;;  %v1549_v21 = vadd.f32 1.0, %v1898_v17 }
 0x3ac   :  { %v1094_v20 = vrot.slane %v1093_v18, 2  ;;  %v1223_v59 = vmul.f32 %v2620_v62, %v1199_v26  ;;  %1413 = vbcast.lane.b32.xlu1 %v2257_v36, 256  ;;  %1899 = vpow2.f32 %v441_v33  ;;  %v2760_v33 = vld [vmem:[#allocation8 + $0x6] ss:$0 sm:$0xff] }
 0x3ad   :  { %v1446_v31 = vpop.permute.xlu0 %1445  ;;  %1901 = vrcp.f32 %v1549_v21 }
 0x3ae   :  { %v1095_v8 = vadd.f32 %v1094_v20, %v1093_v18  ;;  %v1227_v49 = vadd.f32 %v1224_v7, %v1223_v59  ;;  %v1306_v25 = vpop.permute.xlu1 %1305 }
 0x3af   :  { %1333 = vbcast.lane.b32.xlu0 %v2254_v35, 312 }
 0x3b0   :  { %v1096_v11 = vrot.slane %v1095_v8, 1  ;;  %v1228_v38 = vrot.slane %v1227_v49, 4  ;;  %1429 = vbcast.lane.b32.xlu1 %v2257_v36, 272 }
 0x3b1   :  { %v1462_v32 = vpop.permute.xlu0 %1461 }
 0x3b2   :  { %v1097_v9 = vadd.f32 %v1096_v11, %v1095_v8  ;;  %v1229_v63 = vadd.f32 %v1228_v38, %v1227_v49  ;;  %v1322_v62 = vpop.permute.xlu1 %1321  ;;  %v577_v8 = vmul.f32 1.442695, %v2416_v15 }
 0x3b3   :  { %v1335_v29 = vsel %vm424_vm11, %v1306_v25, %v1322_v62  ;;  %1453 = vbcast.lane.b32.xlu0 %v2257_v36, 296 }
 0x3b4   :  { %v1230_v37 = vrot.slane %v1229_v63, 2  ;;  %v1359_v47 = vmul.f32 %v2633_v27, %v1335_v29  ;;  %1041 = vbcast.lane.b32.xlu1 %v2248_v14, 288  ;;  %v1523_v45 = vsel %vm1522_vm15, %v1520_v55, %v1097_v9  ;;  %v1472_v27 = vsel %vm424_vm11, %v1446_v31, %v1462_v32 }
 0x3b5   :  { %v602_v44 = vpop.permute.xlu0 %601  ;;  %v1496_v26 = vmul.f32 %v2683_v40, %v1472_v27 }
 0x3b6   :  { %v1231_v28 = vadd.f32 %v1230_v37, %v1229_v63  ;;  %v1363_v3 = vadd.f32 %v1360_v41, %v1359_v47  ;;  %v1442_v30 = vpop.permute.xlu1 %1441  ;;  %v1560_v41 = vld [vmem:[#allocation7 + $0x28] sm:$0xff]  ;;  %v1900_v37 = vpop.eup %1899 }
 0x3b7   :  { %1469 = vbcast.lane.b32.xlu0 %v2257_v36, 312  ;;  %v525_v21 = vmul.f32 0.0, %v1900_v37  ;;  %v1567_v37 = vld [vmem:[#allocation7 + $0xd0] sm:$0xff] }
 0x3b8   :  { %v1232_v58 = vrot.slane %v1231_v28, 1  ;;  %v1364_v46 = vrot.slane %v1363_v3, 4  ;;  %1057 = vbcast.lane.b32.xlu1 %v2248_v14, 304  ;;  %v443_v14 = vmul.f32 1.442695, %v2399_v0 }
 0x3b9   :  { %v618_v24 = vpop.permute.xlu0 %617 }
 0x3ba   :  { %v1233_v55 = vadd.f32 %v1232_v58, %v1231_v28  ;;  %v1365_v23 = vadd.f32 %v1364_v46, %v1363_v3  ;;  %v1458_v5 = vpop.permute.xlu1 %1457  ;;  %v622_v18 = vsel %vm424_vm11, %v602_v44, %v618_v24  ;;  %1903 = vpow2.f32 %v443_v14  ;;  %v1902_v28 = vpop.eup %1901 }
 0x3bb   :  { %v1471_v13 = vsel %vm424_vm11, %v1442_v30, %v1458_v5  ;;  %v2739_v12 = vmul.f32 %v2363_v48, %v622_v18  ;;  %1905 = vpow2.f32 %v577_v8  ;;  %v851_v30 = vmul.f32 1.442695, %v2408_v1  ;;  %v1563_v8 = vld [vmem:[#allocation7 + $0x70] sm:$0xff] }
 0x3bc   :  { %v1366_v7 = vrot.slane %v1365_v23, 2  ;;  %v1495_v20 = vmul.f32 %v2694_v22, %v1471_v13  ;;  %1177 = vbcast.lane.b32.xlu1 %v2251_v34, 288  ;;  %v1526_v59 = vsel %vm1525_vm1, %v1523_v45, %v1233_v55  ;;  %v579_v22 = vmul.f32 1.442695, %v2402_v6 }
 0x3bd   :  { %v738_v31 = vpop.permute.xlu0 %737  ;;  %v715_v6 = vmul.f32 1.442695, %v2405_v10  ;;  %v713_v24 = vmul.f32 1.442695, %v2420_v43  ;;  %v1555_v55 = vmul.f32 %v1902_v28, %v2160_v16 }
 0x3be   :  { %v1367_v49 = vadd.f32 %v1366_v7, %v1365_v23  ;;  %v1499_v25 = vadd.f32 %v1496_v26, %v1495_v20  ;;  %v462_v11 = vpop.permute.xlu1 %461  ;;  %1907 = vpow2.f32 %v579_v22  ;;  %v1539_v26 = vmul.f32 %v2760_v33, %v2186_v2  ;;  %v1564_v2 = vld [vmem:[#allocation7 + $0x88] sm:$0xff] }
 0x3bf   :  { %1909 = vpow2.f32 %v715_v6 }
 0x3c0   :  { %v1368_v38 = vrot.slane %v1367_v49, 1  ;;  %v1500_v0 = vrot.slane %v1499_v25, 4  ;;  %1193 = vbcast.lane.b32.xlu1 %v2251_v34, 304  ;;  %v1559_v34 = vld [vmem:[#allocation7 + $0x10] sm:$0xff]  ;;  %1911 = vpow2.f32 %v851_v30 }
 0x3c1   :  { %v754_v40 = vpop.permute.xlu0 %753  ;;  %v1799_v45 = vpack.c.bf16 %v1560_v41, %v1559_v34  ;;  %1913 = vpow2.f32 %v713_v24  ;;  %v1565_v41 = vld [vmem:[#allocation7 + $0xa0] sm:$0xff] }
 0x3c2   :  { %v1369_v39 = vadd.f32 %v1368_v38, %v1367_v49  ;;  %v1501_v32 = vadd.f32 %v1500_v0, %v1499_v25  ;;  %v758_v9 = vsel %vm424_vm11, %v738_v31, %v754_v40  ;;  %v466_v63 = vpop.permute.xlu1 %465  ;;  %v1562_v31 = vld [vmem:[#allocation7 + $0x58] sm:$0xff] }
 0x3c3   :  { %v2752_v15 = vmul.f32 %v2368_v50, %v758_v9  ;;  %1800 = vmatprep.subr.bf16.mxu0 %v1799_v45  ;;  %v1123_v9 = vmul.f32 1.442695, %v2433_v57 }
 0x3c4   :  { %v1502_v62 = vrot.slane %v1501_v32, 2  ;;  %1313 = vbcast.lane.b32.xlu1 %v2254_v35, 288  ;;  %v1529_v29 = vsel %vm1528_vm2, %v1526_v59, %v1369_v39  ;;  %1802 = vmatpush3.bf16.msra.mxu0 %v1799_v45  ;;  %v1904_v10 = vpop.eup %1903  ;;  %v1561_v59 = vld [vmem:[#allocation7 + $0x40] sm:$0xff] }
 0x3c5   :  { %v874_v47 = vpop.permute.xlu0 %873  ;;  %v1906_v13 = vpop.eup %1905  ;;  %v526_v7 = vmul.f32 0.0, %v1904_v10  ;;  %v1803_v38 = vpack.c.bf16 %v1562_v31, %v1561_v59  ;;  %v1569_v10 = vld [vmem:[#allocation7 + $0x100] sm:$0xff] }
 0x3c6   :  { %v1503_v44 = vadd.f32 %v1502_v62, %v1501_v32  ;;  %v478_v17 = vpop.permute.xlu1 %477 }
 0x3c7   :  { %v485_v3 = vsel %vm424_vm11, %v462_v11, %v478_v17  ;;  %v987_v11 = vmul.f32 1.442695, %v2428_v56  ;;  %1804 = vmatprep.subr.bf16.mxu0 %v1803_v38  ;;  %v849_v56 = vmul.f32 1.442695, %v2424_v4 }
 0x3c8   :  { %v1504_v58 = vrot.slane %v1503_v44, 1  ;;  %v537_v46 = vmul.f32 %v2371_v51, %v485_v3  ;;  %1329 = vbcast.lane.b32.xlu1 %v2254_v35, 304  ;;  %v1908_v22 = vpop.eup %1907  ;;  %1806 = vmatpush3.bf16.msra.mxu0 %v1803_v38  ;;  %v1259_v3 = vmul.f32 1.442695, %v2437_v60  ;;  %v985_v60 = vmul.f32 1.442695, %v2440_v19 }
 0x3c9   :  { %v890_v27 = vpop.permute.xlu0 %889  ;;  %1915 = vpow2.f32 %v987_v11 }
 0x3ca   :  { %v1505_v23 = vadd.f32 %v1504_v58, %v1503_v44  ;;  %v894_v1 = vsel %vm424_vm11, %v874_v47, %v890_v27  ;;  %v482_v5 = vpop.permute.xlu1 %481  ;;  %v2768_v18 = vadd.f32 %v537_v46, %v525_v21  ;;  %v1910_v47 = vpop.eup %1909  ;;  %v1568_v44 = vld [vmem:[#allocation7 + $0xe8] sm:$0xff]  ;;  %1917 = vpow2.f32 %v1123_v9  ;;  %v1570_v27 = vld [vmem:[#allocation7 + $0x118] sm:$0xff] }
 0x3cb   :  { %v2771_v35 = vmul.f32 %v2374_v52, %v894_v1  ;;  %v486_v14 = vsel %vm424_vm11, %v466_v63, %v482_v5  ;;  %v1912_v28 = vpop.eup %1911  ;;  %1919 = vpow2.f32 %v849_v56  ;;  %v1815_v30 = vpack.c.bf16 %v1568_v44, %v1567_v37 }
 0x3cc   :  { %v538_v16 = vmul.f32 %v2371_v51, %v486_v14  ;;  %1449 = vbcast.lane.b32.xlu1 %v2257_v36, 288  ;;  %v1532_v43 = vsel %vm1531_vm3, %v1529_v29, %v1505_v23  ;;  %v661_v20 = vmul.f32 %v1906_v13, %v2768_v18  ;;  %v1807_v51 = vpack.c.bf16 %v1564_v2, %v1563_v8  ;;  %v1573_v2 = vld [vmem:[#allocation7 + $0x160] sm:$0xff] }
 0x3cd   :  { %v1010_v49 = vpop.permute.xlu0 %1009  ;;  %v1541_v25 = vadd.f32 %v1539_v26, %v1532_v43  ;;  %v1395_v23 = vmul.f32 1.442695, %v2443_v61  ;;  %1921 = vpow2.f32 %v1259_v3  ;;  %v1819_v5 = vpack.c.bf16 %v1570_v27, %v1569_v10  ;;  %v1571_v26 = vld [vmem:[#allocation7 + $0x130] sm:$0xff]  ;;  %v2813_v43 = vld [vmem:[#allocation2 + $0x8] sm:$0xff] }
 0x3ce   :  { %v598_v0 = vpop.permute.xlu1 %597  ;;  %v2782_v40 = vadd.f32 %v538_v16, %v526_v7  ;;  %1808 = vmatprep.subr.bf16.mxu0 %v1807_v51  ;;  %v1572_v16 = vld [vmem:[#allocation7 + $0x148] sm:$0xff]  ;;  %1656 = vrot.lane.b32.xlu0 %v2813_v43, %s2068_s3  ;;  %v2816_v61 = vld [vmem:[#allocation2] sm:$0xff] }
 0x3cf   :  { %v1557_v39 = vmul.f32 %v1555_v55, %v1541_v25  ;;  %1810 = vmatpush3.bf16.msra.mxu0 %v1807_v51  ;;  %1923 = vpow2.f32 %v1395_v23  ;;  %v1823_v8 = vpack.c.bf16 %v1572_v16, %v1571_v26 }
 0x3d0   :  { %1465 = vbcast.lane.b32.xlu1 %v2257_v36, 304  ;;  %v662_v32 = vmul.f32 %v1908_v22, %v2782_v40  ;;  %v1566_v36 = vld [vmem:[#allocation7 + $0xb8] sm:$0xff]  ;;  %1925 = vpow2.f32 %v985_v60 }
 0x3d1   :  { %1756 = vmatprep.mubr.f32.mxu0 %v1557_v39  ;;  %v1026_v63 = vpop.permute.xlu0 %1025  ;;  %v1811_v45 = vpack.c.bf16 %v1566_v36, %v1565_v41  ;;  %v2973_v36 = vld [vmem:[#allocation17_spill] sm:$0xff] }
 0x3d2   :  { %v1030_v62 = vsel %vm424_vm11, %v1010_v49, %v1026_v63  ;;  %v614_v29 = vpop.permute.xlu1 %613  ;;  %v2791_v34 = vadd.f32 %v2739_v12, %v662_v32  ;;  %v2972_v32 = vld [vmem:[#allocation19_spill] sm:$0xff] }
 0x3d3   :  { %v1082_v57 = vmul.f32 %v2377_v53, %v1030_v62  ;;  %v621_v6 = vsel %vm424_vm11, %v598_v0, %v614_v29  ;;  %1812 = vmatprep.subr.bf16.mxu0 %v1811_v45  ;;  %v1574_v0 = vld [vmem:[#allocation7 + $0x178] sm:$0xff]  ;;  %v1121_v9 = vmul.f32 1.442695, %v2972_v32 }
 0x3d4   :  { %v673_v4 = vmul.f32 %v2363_v48, %v621_v6  ;;  %v798_v17 = vmul.f32 %v1910_v47, %v2791_v34  ;;  %v1914_v48 = vpop.eup %1913  ;;  %1814 = vmatpush3.bf16.msra.mxu0 %v1811_v45  ;;  %1654 = vrot.lane.b32.xlu1 %v2816_v61, %s2068_s3  ;;  %v1827_v63 = vpack.c.bf16 %v1574_v0, %v1573_v2 }
 0x3d5   :  { %v1146_v12 = vpop.permute.xlu0 %1145  ;;  %1816 = vmatprep.subr.bf16.mxu0 %v1815_v30  ;;  %v1916_v19 = vpop.eup %1915  ;;  %1927 = vpow2.f32 %v1121_v9 }
 0x3d6   :  { %v734_v58 = vpop.permute.xlu1 %733  ;;  %v2800_v46 = vadd.f32 %v2752_v15, %v798_v17  ;;  %v2802_v21 = vadd.f32 %v673_v4, %v661_v20  ;;  %v1918_v49 = vpop.eup %1917 }
 0x3d7   :  { %v1920_v51 = vpop.eup %1919 }
 0x3d8   :  { %v934_v24 = vmul.f32 %v1912_v28, %v2800_v46  ;;  %v797_v55 = vmul.f32 %v1914_v48, %v2802_v21  ;;  %1818 = vmatpush3.bf16.msra.mxu0 %v1815_v30  ;;  %v1922_v41 = vpop.eup %1921 }
 0x3d9   :  { %v1162_v1 = vpop.permute.xlu0 %1161  ;;  %1820 = vmatprep.subr.bf16.mxu0 %v1819_v5  ;;  %v1924_v44 = vpop.eup %1923 }
 0x3da   :  { %v1166_v15 = vsel %vm424_vm11, %v1146_v12, %v1162_v1  ;;  %v750_v13 = vpop.permute.xlu1 %749  ;;  %v2811_v14 = vadd.f32 %v2771_v35, %v934_v24  ;;  %v1926_v12 = vpop.eup %1925 }
 0x3db   :  { %v1218_v7 = vmul.f32 %v2380_v54, %v1166_v15  ;;  %v757_v20 = vsel %vm424_vm11, %v734_v58, %v750_v13  ;;  %v2975_v13 = vld [vmem:[#allocation21_spill] sm:$0xff] }
 0x3dc   :  { %v809_v35 = vmul.f32 %v2368_v50, %v757_v20  ;;  %v1070_v59 = vmul.f32 %v1916_v19, %v2811_v14  ;;  %1822 = vmatpush3.bf16.msra.mxu0 %v1819_v5  ;;  %v1393_v26 = vmul.f32 1.442695, %v2975_v13 }
 0x3dd   :  { %v1282_v31 = vpop.permute.xlu0 %1281  ;;  %1824 = vmatprep.subr.bf16.mxu0 %v1823_v8 }
 0x3de   :  { %v870_v25 = vpop.permute.xlu1 %869  ;;  %v2824_v11 = vadd.f32 %v1082_v57, %v1070_v59  ;;  %v2826_v38 = vadd.f32 %v809_v35, %v797_v55 }
 0x3df   :  { %v1928_v60 = vpop.eup %1927 }
 0x3e0   :  { %v1206_v22 = vmul.f32 %v1918_v49, %v2824_v11  ;;  %v933_v50 = vmul.f32 %v1920_v51, %v2826_v38  ;;  %1826 = vmatpush3.bf16.msra.mxu0 %v1823_v8 }
 0x3e1   :  { %v1298_v39 = vpop.permute.xlu0 %1297  ;;  %1828 = vmatprep.subr.bf16.mxu0 %v1827_v63 }
 0x3e2   :  { %v1302_v56 = vsel %vm424_vm11, %v1282_v31, %v1298_v39  ;;  %v886_v62 = vpop.permute.xlu1 %885  ;;  %v2833_v29 = vadd.f32 %v1218_v7, %v1206_v22 }
 0x3e3   :  { %v1354_v37 = vmul.f32 %v2973_v36, %v1302_v56  ;;  %v893_v47 = vsel %vm424_vm11, %v870_v25, %v886_v62 }
 0x3e4   :  { %v945_v57 = vmul.f32 %v2374_v52, %v893_v47  ;;  %v1342_v6 = vmul.f32 %v1922_v41, %v2833_v29  ;;  %1830 = vmatpush3.bf16.msra.mxu0 %v1827_v63  ;;  %v2974_v52 = vld [vmem:[#allocation20_spill] sm:$0xff] }
 0x3e5   :  { %v502_v45 = vpop.permute.xlu0 %501  ;;  %v1257_v10 = vmul.f32 1.442695, %v2974_v52 }
 0x3e6   :  { %v1006_v4 = vpop.permute.xlu1 %1005  ;;  %v2840_v17 = vadd.f32 %v945_v57, %v933_v50  ;;  %v2842_v28 = vadd.f32 %v1354_v37, %v1342_v6 }
 0x3e7   :  { %1929 = vpow2.f32 %v1257_v10 }
 0x3e8   :  { %v1478_v3 = vmul.f32 %v1924_v44, %v2842_v28  ;;  %v1069_v30 = vmul.f32 %v1926_v12, %v2840_v17  ;;  %1931 = vpow2.f32 %v1393_v26  ;;  %v2976_v12 = vld [vmem:[#allocation18_spill] sm:$0xff] }
 0x3e9   :  { %v518_v58 = vpop.permute.xlu0 %517 }
 0x3ea   :  { %v1022_v27 = vpop.permute.xlu1 %1021  ;;  %v522_v39 = vsel %vm424_vm11, %v502_v45, %v518_v58 }
 0x3eb   :  { %v1029_v48 = vsel %vm424_vm11, %v1006_v4, %v1022_v27  ;;  %v546_v56 = vmul.f32 %v2782_v40, %v522_v39 }
 0x3ec   :  { %v1081_v24 = vmul.f32 %v2377_v53, %v1029_v48 }
 0x3ed   :  { %v638_v55 = vpop.permute.xlu0 %637 }
 0x3ee   :  { %v1142_v23 = vpop.permute.xlu1 %1141  ;;  %v2850_v1 = vadd.f32 %v1081_v24, %v1069_v30 }
 0x3f0   :  { %v1205_v5 = vmul.f32 %v1928_v60, %v2850_v1 }
 0x3f1   :  { %v654_v15 = vpop.permute.xlu0 %653  ;;  %v1930_v59 = vpop.eup %1929 }
 0x3f2   :  { %v1158_v16 = vpop.permute.xlu1 %1157  ;;  %v658_v57 = vsel %vm424_vm11, %v638_v55, %v654_v15 }
 0x3f3   :  { %v1165_v19 = vsel %vm424_vm11, %v1142_v23, %v1158_v16 }
 0x3f4   :  { %v1217_v7 = vmul.f32 %v2380_v54, %v1165_v19  ;;  %v1932_v54 = vpop.eup %1931 }
 0x3f5   :  { %v774_v20 = vpop.permute.xlu0 %773 }
 0x3f6   :  { %v1278_v53 = vpop.permute.xlu1 %1277  ;;  %v2857_v35 = vadd.f32 %v1217_v7, %v1205_v5 }
 0x3f8   :  { %v1341_v31 = vmul.f32 %v1930_v59, %v2857_v35 }
 0x3f9   :  { %v790_v8 = vpop.permute.xlu0 %789 }
 0x3fa   :  { %v1294_v49 = vpop.permute.xlu1 %1293  ;;  %v794_v55 = vsel %vm424_vm11, %v774_v20, %v790_v8 }
 0x3fb   :  { %v1301_v25 = vsel %vm424_vm11, %v1278_v53, %v1294_v49  ;;  %v818_v13 = vmul.f32 %v2800_v46, %v794_v55 }
 0x3fc   :  { %v1353_v2 = vmul.f32 %v2973_v36, %v1301_v25 }
 0x3fd   :  { %v910_v0 = vpop.permute.xlu0 %909 }
 0x3fe   :  { %v498_v51 = vpop.permute.xlu1 %497  ;;  %v2863_v22 = vadd.f32 %v1353_v2, %v1341_v31 }
 0x400   :  { %v2866_v50 = vmul.f32 %v1932_v54, %v2863_v22 }
 0x401   :  { %v926_v32 = vpop.permute.xlu0 %925 }
 0x402   :  { %v514_v9 = vpop.permute.xlu1 %513  ;;  %v930_v20 = vsel %vm424_vm11, %v910_v0, %v926_v32 }
 0x403   :  { %v521_v63 = vsel %vm424_vm11, %v498_v51, %v514_v9  ;;  %v954_v51 = vmul.f32 %v2811_v14, %v930_v20 }
 0x404   :  { %v545_v62 = vmul.f32 %v2768_v18, %v521_v63  ;;  %v682_v18 = vmul.f32 %v2791_v34, %v658_v57 }
 0x405   :  { %v1418_v41 = vpop.permute.xlu0 %1417 }
 0x406   :  { %v554_v36 = vadd.f32 %v546_v56, %v545_v62  ;;  %v634_v37 = vpop.permute.xlu1 %633 }
 0x408   :  { %v555_v47 = vrot.slane %v554_v36, 4 }
 0x409   :  { %v1434_v6 = vpop.permute.xlu0 %1433 }
 0x40a   :  { %v556_v44 = vadd.f32 %v555_v47, %v554_v36  ;;  %v1438_v45 = vsel %vm424_vm11, %v1418_v41, %v1434_v6  ;;  %v650_v4 = vpop.permute.xlu1 %649 }
 0x40b   :  { %v1490_v30 = vmul.f32 %v2976_v12, %v1438_v45  ;;  %v657_v40 = vsel %vm424_vm11, %v634_v37, %v650_v4 }
 0x40c   :  { %v681_v58 = vmul.f32 %v2802_v21, %v657_v40  ;;  %v557_v10 = vrot.slane %v556_v44, 2 }
 0x40d   :  { %v2883_v52 = vadd.f32 %v1490_v30, %v1478_v3  ;;  %v1046_v26 = vpop.permute.xlu0 %1045 }
 0x40e   :  { %v690_v27 = vadd.f32 %v682_v18, %v681_v58  ;;  %v770_v48 = vpop.permute.xlu1 %769  ;;  %v558_v23 = vadd.f32 %v557_v10, %v556_v44 }
 0x410   :  { %v691_v24 = vrot.slane %v690_v27, 4  ;;  %v559_v3 = vrot.slane %v558_v23, 1 }
 0x411   :  { %v1062_v49 = vpop.permute.xlu0 %1061 }
 0x412   :  { %v692_v60 = vadd.f32 %v691_v24, %v690_v27  ;;  %v786_v5 = vpop.permute.xlu1 %785  ;;  %v560_v31 = vadd.f32 %v559_v3, %v558_v23  ;;  %v1066_v40 = vsel %vm424_vm11, %v1046_v26, %v1062_v49 }
 0x413   :  { %v793_v15 = vsel %vm424_vm11, %v770_v48, %v786_v5  ;;  %v1090_v27 = vmul.f32 %v2824_v11, %v1066_v40  ;;  %v2977_v5 = vld [vmem:[#allocation15_spill] sm:$0xff] }
 0x414   :  { %v693_v34 = vrot.slane %v692_v60, 2  ;;  %v817_v21 = vmul.f32 %v2826_v38, %v793_v15  ;;  %v1705_v15 = vmul.f32 -1.442695, %v2977_v5 }
 0x415   :  { %v1182_v0 = vpop.permute.xlu0 %1181 }
 0x416   :  { %v694_v16 = vadd.f32 %v693_v34, %v692_v60  ;;  %v826_v19 = vadd.f32 %v818_v13, %v817_v21  ;;  %v906_v7 = vpop.permute.xlu1 %905  ;;  %1933 = vpow2.f32 %v1705_v15 }
 0x418   :  { %v695_v53 = vrot.slane %v694_v16, 1  ;;  %v827_v59 = vrot.slane %v826_v19, 4 }
 0x419   :  { %v1198_v44 = vpop.permute.xlu0 %1197 }
 0x41a   :  { %v696_v8 = vadd.f32 %v695_v53, %v694_v16  ;;  %v828_v25 = vadd.f32 %v827_v59, %v826_v19  ;;  %v922_v2 = vpop.permute.xlu1 %921 }
 0x41b   :  { %v929_v46 = vsel %vm424_vm11, %v906_v7, %v922_v2 }
 0x41c   :  { %v1515_v38 = vsel %vm1513_vm12, %v560_v31, %v696_v8  ;;  %v829_v54 = vrot.slane %v828_v25, 2  ;;  %v953_v39 = vmul.f32 %v2840_v17, %v929_v46 }
 0x41d   :  { %v1318_v24 = vpop.permute.xlu0 %1317 }
 0x41e   :  { %v830_v9 = vadd.f32 %v829_v54, %v828_v25  ;;  %v962_v63 = vadd.f32 %v954_v51, %v953_v39  ;;  %v1414_v56 = vpop.permute.xlu1 %1413 }
 0x420   :  { %v831_v62 = vrot.slane %v830_v9, 1  ;;  %v963_v32 = vrot.slane %v962_v63, 4 }
 0x421   :  { %v1334_v13 = vpop.permute.xlu0 %1333 }
 0x422   :  { %v832_v41 = vadd.f32 %v831_v62, %v830_v9  ;;  %v964_v36 = vadd.f32 %v963_v32, %v962_v63  ;;  %v1430_v37 = vpop.permute.xlu1 %1429  ;;  %v1338_v31 = vsel %vm424_vm11, %v1318_v24, %v1334_v13  ;;  %v1934_v63 = vpop.eup %1933  ;;  %v2978_v24 = vld [vmem:[#allocation16_spill] sm:$0xff] }
 0x423   :  { %v1437_v47 = vsel %vm424_vm11, %v1414_v56, %v1430_v37  ;;  %v1550_v37 = vadd.f32 1.0, %v1934_v63 }
 0x424   :  { %v1518_v57 = vsel %vm1516_vm13, %v1515_v38, %v832_v41  ;;  %v965_v14 = vrot.slane %v964_v36, 2  ;;  %v1489_v6 = vmul.f32 %v2976_v12, %v1437_v47 }
 0x425   :  { %v1454_v53 = vpop.permute.xlu0 %1453  ;;  %1935 = vrcp.f32 %v1550_v37 }
 0x426   :  { %v966_v45 = vadd.f32 %v965_v14, %v964_v36  ;;  %v1042_v17 = vpop.permute.xlu1 %1041  ;;  %v1493_v4 = vadd.f32 %v1489_v6, %v2866_v50  ;;  %v1202_v50 = vsel %vm424_vm11, %v1182_v0, %v1198_v44 }
 0x427   :  { %v1226_v11 = vmul.f32 %v2833_v29, %v1202_v50  ;;  %v1362_v29 = vmul.f32 %v2842_v28, %v1338_v31 }
 0x428   :  { %v967_v30 = vrot.slane %v966_v45, 1 }
 0x429   :  { %v1470_v38 = vpop.permute.xlu0 %1469 }
 0x42a   :  { %v968_v18 = vadd.f32 %v967_v30, %v966_v45  ;;  %v1058_v58 = vpop.permute.xlu1 %1057  ;;  %v1474_v0 = vsel %vm424_vm11, %v1454_v53, %v1470_v38 }
 0x42b   :  { %v1065_v10 = vsel %vm424_vm11, %v1042_v17, %v1058_v58  ;;  %v1498_v47 = vmul.f32 %v2883_v52, %v1474_v0  ;;  %v1540_v52 = vmul.f32 %v2760_v33, %v2978_v24 }
 0x42c   :  { %v1521_v48 = vsel %vm1519_vm14, %v1518_v57, %v968_v18  ;;  %v1089_v12 = vmul.f32 %v2850_v1, %v1065_v10 }
 0x42e   :  { %v1098_v55 = vadd.f32 %v1090_v27, %v1089_v12  ;;  %v1178_v23 = vpop.permute.xlu1 %1177 }
 0x42f   :  { %v1936_v42 = vpop.eup %1935 }
 0x430   :  { %v1099_v60 = vrot.slane %v1098_v55, 4 }
 0x432   :  { %v1100_v34 = vadd.f32 %v1099_v60, %v1098_v55  ;;  %v1194_v26 = vpop.permute.xlu1 %1193 }
 0x433   :  { %v1201_v21 = vsel %vm424_vm11, %v1178_v23, %v1194_v26 }
 0x434   :  { %v1101_v3 = vrot.slane %v1100_v34, 2  ;;  %v1225_v16 = vmul.f32 %v2857_v35, %v1201_v21 }
 0x436   :  { %v1102_v1 = vadd.f32 %v1101_v3, %v1100_v34  ;;  %v1234_v19 = vadd.f32 %v1226_v11, %v1225_v16  ;;  %v1314_v7 = vpop.permute.xlu1 %1313 }
 0x438   :  { %v1103_v59 = vrot.slane %v1102_v1, 1  ;;  %v1235_v20 = vrot.slane %v1234_v19, 4 }
 0x43a   :  { %v1104_v8 = vadd.f32 %v1103_v59, %v1102_v1  ;;  %v1236_v49 = vadd.f32 %v1235_v20, %v1234_v19  ;;  %v1330_v25 = vpop.permute.xlu1 %1329 }
 0x43b   :  { %v1337_v2 = vsel %vm424_vm11, %v1314_v7, %v1330_v25 }
 0x43c   :  { %v1524_v35 = vsel %vm1522_vm15, %v1521_v48, %v1104_v8  ;;  %v1237_v46 = vrot.slane %v1236_v49, 2  ;;  %v1361_v51 = vmul.f32 %v2863_v22, %v1337_v2 }
 0x43e   :  { %v1238_v54 = vadd.f32 %v1237_v46, %v1236_v49  ;;  %v1370_v39 = vadd.f32 %v1362_v29, %v1361_v51  ;;  %v1450_v9 = vpop.permute.xlu1 %1449 }
 0x440   :  { %v1239_v56 = vrot.slane %v1238_v54, 1  ;;  %v1371_v62 = vrot.slane %v1370_v39, 4  ;;  %v1657_v60 = vpop.permute.xlu0 %1656 }
 0x442   :  { %v1240_v32 = vadd.f32 %v1239_v56, %v1238_v54  ;;  %v1372_v41 = vadd.f32 %v1371_v62, %v1370_v39  ;;  %v1466_v36 = vpop.permute.xlu1 %1465 }
 0x443   :  { %v1473_v28 = vsel %vm424_vm11, %v1450_v9, %v1466_v36 }
 0x444   :  { %v1527_v22 = vsel %vm1525_vm1, %v1524_v35, %v1240_v32  ;;  %v1373_v57 = vrot.slane %v1372_v41, 2  ;;  %v1497_v14 = vmul.f32 %v1493_v4, %v1473_v28  ;;  %v1556_v4 = vmul.f32 %v1936_v42, %v2977_v5 }
 0x446   :  { %v1374_v6 = vadd.f32 %v1373_v57, %v1372_v41  ;;  %v1506_v44 = vadd.f32 %v1498_v47, %v1497_v14  ;;  %v1655_v50 = vpop.permute.xlu1 %1654 }
 0x448   :  { %v1375_v45 = vrot.slane %v1374_v6, 1  ;;  %v1507_v17 = vrot.slane %v1506_v44, 4 }
 0x44a   :  { %v1376_v30 = vadd.f32 %v1375_v45, %v1374_v6  ;;  %v1508_v40 = vadd.f32 %v1507_v17, %v1506_v44 }
 0x44c   :  { %v1530_v18 = vsel %vm1528_vm2, %v1527_v22, %v1376_v30  ;;  %v1509_v58 = vrot.slane %v1508_v40, 2 }
 0x44e   :  { %v1510_v10 = vadd.f32 %v1509_v58, %v1508_v40 }
 0x450   :  { %v1511_v27 = vrot.slane %v1510_v10, 1 }
 0x452   :  { %v1512_v48 = vadd.f32 %v1511_v27, %v1510_v10 }
 0x454   :  { %v1533_v12 = vsel %vm1531_vm3, %v1530_v18, %v1512_v48 }
 0x455   :  { %v1542_v55 = vadd.f32 %v1540_v52, %v1533_v12 }
 0x457   :  { %v1558_v23 = vmul.f32 %v1556_v4, %v1542_v55 }
 0x459   :  { %1757 = vmatmul.mubr.f32.vlgmr.msra.gmra.mrb[4].mxu0 %v1558_v23 }
 0x52c   :  { %v1758_v15 = vpop.f32.mrb[4].mxu0 }
 0x52d   :  { %v1661_v13 = vadd.f32 %v1758_v15, %v1657_v60  ;;  %v1641_v34 = vpop.f32.mrb[5].mxu0  ;;  %v1651_v21 = vadd.f32 %v2813_v43, %v1758_v15 }
 0x52e   :  { %v1660_v26 = vadd.f32 %v1655_v50, %v1641_v34  ;;  %v1650_v33 = vadd.f32 %v2816_v61, %v1641_v34 }
 0x52f   :  { %1666 = vrot.lane.b32.xlu0 %v1661_v13, %s2069_s15 }
 0x530   :  { %1664 = vrot.lane.b32.xlu1 %v1660_v26, %s2069_s15 }
 0x5a1   :  { %v1667_v11 = vpop.permute.xlu0 %1666 }
 0x5a2   :  { %v1671_v5 = vmul.f32 %v1667_v11, %v1651_v21  ;;  %v1665_v3 = vpop.permute.xlu1 %1664 }
 0x5a3   :  { %v1670_v16 = vmul.f32 %v1665_v3, %v1650_v33 }
 0x5a4   :  { %1673 = vst.msk [vmem:[#allocation10 + $0x8] sm:$0xff] %vm77_vm0, %v1671_v5 }
 0x5a5   :  { %1672 = vst.msk [vmem:[#allocation10] sm:$0xff] %vm77_vm0, %v1670_v16 }
 0x5a6   :  { %2038 = shalt.err (!%p2035_p8)
}
 0x5a7   :  { %s2039_s21 = scalar_lea.hbm %s2958_s4, 256 }
 0x5a8   :  { %p2040_p9 = scmp.ne.s32.totalorder %s2958_s4, %s2039_s21  ;;  %p2043_p10 = scmp.lt.u32.totalorder %s2039_s21, %s2958_s4 }
 0x5aa   :  { %p2045_p11 = pnand %p2043_p10, %p2040_p9 }
 0x5ac   :  { %2048 = shalt.err (!%p2045_p11)
}
 0x5ad   :  { %1685 = dma.vmem_to_hbm [thread:$0]  %s1680_s17, 256, %s2958_s4, [#allocation4], %s2061_s1, %s2061_s1, %s2062_s13  }
 0x5ae   :  { %2055 = dma.done.wait [#allocation4], 256  }
 0x5af   :  { %2056 = vsyncadd [#allocation4], 4294967040 }
 0x5b0   :  { %1689 = vsyncpa [#allocation3], 1 }
 0x5b1   :  { %1690 = vsyncpa [#allocation6], 1 }
 0x5b2   :  { %1691 = vsyncpa [#allocation9], 1 }
 0x5b3   :  { %1692 = vsyncpa [#allocation4], 1 }

</bundles_post_ra>
